<compile_context>
chip_gen: v7x
topology: tpu7x:2x2x1
jax: 0.10.0
libtpu: 0.0.40
codegen_flags: <defaults>
</compile_context>

<pallas_src>
import functools

import jax
import jax.numpy as jnp
from jax.experimental import pallas as pl
from jax.experimental.pallas import tpu as pltpu


def _bottleneckx_kernel(x_ref, w1_ref, b1_ref, w2_ref, m2_ref, b2_ref,
                        w3_ref, b3_ref, *rest, width, dilation, has_residual):
    # x_ref : (1, Cin, HW)      flattened NCHW image
    # w1_ref: (Cb, Cin)         conv1 weight with BN1 scale folded in
    # b1_ref: (Cb, 1)           BN1 bias
    # w2_ref: (Cb, 9*Cb)        per-tap block-diag conv2 weight (BN2 folded), taps on K
    # m2_ref: (9, 1, HW)        per-tap border masks (zero where the tap is OOB)
    # b2_ref: (Cb, 1)           BN2 bias
    # w3_ref: (Cout, Cb)        conv3 weight with BN3 scale folded in
    # b3_ref: (Cout, 1)         BN3 bias
    # rest  : (res_ref, o_ref) if has_residual else (o_ref,)
    if has_residual:
        res_ref, o_ref = rest
    else:
        (o_ref,) = rest
        res_ref = x_ref                      # residual = x (already in VMEM)

    hw = x_ref.shape[-1]
    x = x_ref[0].astype(jnp.float32)         # (Cin, HW)

    # ---- conv1 (1x1) + BN1 + ReLU : (Cb, Cin) @ (Cin, HW) on the MXU ----
    t1 = jnp.dot(w1_ref[...], x, preferred_element_type=jnp.float32)
    t1 = jnp.maximum(t1 + b1_ref[...], 0.0)  # (Cb, HW)

    # ---- conv2 (3x3, grouped) + BN2 + ReLU ----
    # Tap (ky, kx): shift the flattened spatial axis by dy*W + dx (circular
    # lane roll on the XLU), zero positions whose source fell outside the
    # image (precomputed mask, VPU).  Stack all 9 shifted taps along the
    # contraction axis and do a single (Cb, 9*Cb) @ (9*Cb, HW) MXU matmul.
    taps = []
    for ky in range(3):
        for kx in range(3):
            t = ky * 3 + kx
            delta = dilation * ((ky - 1) * width + (kx - 1))
            if delta == 0:
                taps.append(t1)              # center tap: always valid, no mask
            else:
                taps.append(pltpu.roll(t1, shift=(-delta) % hw, axis=1) * m2_ref[t])
    sh = jnp.concatenate(taps, axis=0)       # (9*Cb, HW)
    t2 = jnp.dot(w2_ref[...], sh, preferred_element_type=jnp.float32)
    t2 = jnp.maximum(t2 + b2_ref[...], 0.0)  # (Cb, HW)

    # ---- conv3 (1x1) + BN3 + residual + ReLU ----
    t3 = jnp.dot(w3_ref[...], t2, preferred_element_type=jnp.float32) + b3_ref[...]
    t3 = t3 + res_ref[0].astype(jnp.float32)
    o_ref[0] = jnp.maximum(t3, 0.0).astype(o_ref.dtype)


def bottleneckx_forward(x, params, *, stride=1, dilation=1, cardinality=32,
                        residual=None, eps=1e-5):
    """x: (N, Cin, H, W) NCHW. params: torch-layout conv weights + FrozenBN buffers."""
    if stride != 1:
        # TODO(synk): stride>1 needs a strided output gather after conv2.
        raise NotImplementedError("bottleneckx_forward only supports stride=1")

    N, Cin, H, W = x.shape
    HW = H * W
    w1, w2, w3 = params["w1"], params["w2"], params["w3"]
    Cb, Cout = w1.shape[0], w3.shape[0]
    G = cardinality
    assert Cb % G == 0, "bottle_planes must be divisible by cardinality"
    gs = Cb // G

    # ---- fold FrozenBN into per-channel scale (into weights) + bias ----
    def _fold(prefix):
        s = params[prefix + "_w"] * jax.lax.rsqrt(params[prefix + "_rv"] + eps)
        b = params[prefix + "_b"] - params[prefix + "_rm"] * s
        return s.astype(jnp.float32), b.astype(jnp.float32)

    s1, bb1 = _fold("bn1")
    s2, bb2 = _fold("bn2")
    s3, bb3 = _fold("bn3")

    w1_eff = (w1[:, :, 0, 0] * s1[:, None]).astype(jnp.float32)    # (Cb, Cin)
    w3_eff = (w3[:, :, 0, 0] * s3[:, None]).astype(jnp.float32)    # (Cout, Cb)

    # grouped conv2 weight -> dense block-diagonal (out, in, 3, 3), vectorized
    w2_g = w2.astype(jnp.float32).reshape(G, gs, gs, 3, 3)         # (g, o, i, ky, kx)
    eye = jnp.eye(G, dtype=jnp.float32)
    w2_full = jnp.einsum("goikl,gh->gohikl", w2_g, eye).reshape(Cb, Cb, 3, 3)
    w2_full = w2_full * s2[:, None, None, None]                    # fold BN2 scale
    # flatten taps onto the contraction axis: column index = (ky*3+kx)*Cb + cin
    w2_flat = jnp.transpose(w2_full, (0, 2, 3, 1)).reshape(Cb, 9 * Cb)

    b1v = bb1.reshape(Cb, 1)
    b2v = bb2.reshape(Cb, 1)
    b3v = bb3.reshape(Cout, 1)

    # per-tap validity masks over the flattened spatial axis
    ys = jnp.arange(H).reshape(H, 1)
    xs = jnp.arange(W).reshape(1, W)
    masks = []
    for ky in range(3):
        for kx in range(3):
            dy = (ky - 1) * dilation
            dx = (kx - 1) * dilation
            valid = ((ys + dy >= 0) & (ys + dy < H) &
                     (xs + dx >= 0) & (xs + dx < W))
            masks.append(valid.reshape(1, HW))
    m2 = jnp.stack(masks).astype(jnp.float32)                      # (9, 1, HW)

    x_flat = x.reshape(N, Cin, HW)
    has_res = residual is not None
    if has_res:
        assert residual.shape == (N, Cout, H, W)
        res_flat = residual.reshape(N, Cout, HW)
    else:
        assert Cin == Cout, "residual=None requires inplanes == planes"

    kernel = functools.partial(_bottleneckx_kernel, width=W,
                               dilation=dilation, has_residual=has_res)

    in_specs = [
        pl.BlockSpec((1, Cin, HW), lambda n: (n, 0, 0)),
        pl.BlockSpec((Cb, Cin), lambda n: (0, 0)),
        pl.BlockSpec((Cb, 1), lambda n: (0, 0)),
        pl.BlockSpec((Cb, 9 * Cb), lambda n: (0, 0)),
        pl.BlockSpec((9, 1, HW), lambda n: (0, 0, 0)),
        pl.BlockSpec((Cb, 1), lambda n: (0, 0)),
        pl.BlockSpec((Cout, Cb), lambda n: (0, 0)),
        pl.BlockSpec((Cout, 1), lambda n: (0, 0)),
    ]
    args = [x_flat, w1_eff, b1v, w2_flat, m2, b2v, w3_eff, b3v]
    if has_res:
        in_specs.append(pl.BlockSpec((1, Cout, HW), lambda n: (n, 0, 0)))
        args.append(res_flat)

    out_flat = pl.pallas_call(
        kernel,
        out_shape=jax.ShapeDtypeStruct((N, Cout, HW), x.dtype),
        grid_spec=pltpu.PrefetchScalarGridSpec(
            num_scalar_prefetch=0,
            grid=(N,),
            in_specs=in_specs,
            out_specs=pl.BlockSpec((1, Cout, HW), lambda n: (n, 0, 0)),
        ),
        compiler_params=pltpu.CompilerParams(
            dimension_semantics=("parallel",)),
    )(*args)

    return out_flat.reshape(N, Cout, H, W)


# ------------------------- pure-JAX reference -------------------------

def _conv2d_ref(x, w, *, stride=1, dilation=1, groups=1, padding=0):
    return jax.lax.conv_general_dilated(
        x, w, window_strides=(stride, stride),
        padding=[(padding, padding), (padding, padding)],
        rhs_dilation=(dilation, dilation),
        dimension_numbers=("NCHW", "OIHW", "NCHW"),
        feature_group_count=groups,
        precision=jax.lax.Precision.HIGHEST)


def bottleneckx_reference(x, params, *, stride=1, dilation=1, cardinality=32,
                          residual=None, eps=1e-5):
    if residual is None:
        residual = x

    def bn(y, prefix):
        w, b = params[prefix + "_w"], params[prefix + "_b"]
        rm, rv = params[prefix + "_rm"], params[prefix + "_rv"]
        s = (w * jax.lax.rsqrt(rv + eps)).reshape(1, -1, 1, 1)
        bb = (b - rm * w * jax.lax.rsqrt(rv + eps)).reshape(1, -1, 1, 1)
        return y * s + bb

    out = jnp.maximum(bn(_conv2d_ref(x, params["w1"]), "bn1"), 0.0)
    out = jnp.maximum(bn(_conv2d_ref(out, params["w2"], stride=stride,
                                     dilation=dilation, groups=cardinality,
                                     padding=dilation), "bn2"), 0.0)
    out = bn(_conv2d_ref(out, params["w3"]), "bn3")
    return jnp.maximum(out + residual, 0.0)


if __name__ == "__main__":
    key = jax.random.PRNGKey(0)
    keys = jax.random.split(key, 9)

    # BottleneckX(inplanes=32, planes=32): cardinality=32 forces channel counts
    # that are multiples of 32; bottle_planes = planes * 32 // 32 = 32 (group size 1).
    N, H, W = 2, 16, 16
    inplanes, planes, cardinality = 32, 32, 32
    bottle = planes * cardinality // 32

    x = jax.random.normal(keys[0], (N, inplanes, H, W), dtype=jnp.float32)

    def bn_params(k, n):
        kw, kb, km, kv = jax.random.split(k, 4)
        return (1.0 + 0.1 * jax.random.normal(kw, (n,), jnp.float32),
                0.1 * jax.random.normal(kb, (n,), jnp.float32),
                0.1 * jax.random.normal(km, (n,), jnp.float32),
                jnp.abs(1.0 + 0.1 * jax.random.normal(kv, (n,), jnp.float32)))

    bn1 = bn_params(keys[1], bottle)
    bn2 = bn_params(keys[2], bottle)
    bn3 = bn_params(keys[3], planes)

    params = {
        "w1": 0.15 * jax.random.normal(keys[4], (bottle, inplanes, 1, 1), jnp.float32),
        "w2": 0.30 * jax.random.normal(keys[5], (bottle, bottle // cardinality, 3, 3), jnp.float32),
        "w3": 0.15 * jax.random.normal(keys[6], (planes, bottle, 1, 1), jnp.float32),
        "bn1_w": bn1[0], "bn1_b": bn1[1], "bn1_rm": bn1[2], "bn1_rv": bn1[3],
        "bn2_w": bn2[0], "bn2_b": bn2[1], "bn2_rm": bn2[2], "bn2_rv": bn2[3],
        "bn3_w": bn3[0], "bn3_b": bn3[1], "bn3_rm": bn3[2], "bn3_rv": bn3[3],
    }

    # residual = None path (residual taken from x inside the kernel)
    out = bottleneckx_forward(x, params, stride=1, dilation=1,
                              cardinality=cardinality)
    out = jax.block_until_ready(out)
    ref = bottleneckx_reference(x, params, stride=1, dilation=1,
                                cardinality=cardinality)
    assert out.shape == (N, planes, H, W)
    assert jnp.allclose(out, ref, atol=3e-3, rtol=3e-3)

    # explicit residual path
    res = jax.random.normal(keys[7], (N, planes, H, W), dtype=jnp.float32)
    out_r = bottleneckx_forward(x, params, stride=1, dilation=1,
                                cardinality=cardinality, residual=res)
    out_r = jax.block_until_ready(out_r)
    ref_r = bottleneckx_reference(x, params, stride=1, dilation=1,
                                  cardinality=cardinality, residual=res)
    assert jnp.allclose(out_r, ref_r, atol=3e-3, rtol=3e-3)

    print("KERNEL_OK")
</pallas_src>

<mosaic_0001>
module attributes {stable_mosaic.version = 11 : i64} {
  func.func @_bottleneckx_kernel(%arg0: i32, %arg1: memref<1x32x256xf32, #tpu.memory_space<vmem>>, %arg2: memref<32x32xf32, #tpu.memory_space<vmem>>, %arg3: memref<32x1xf32, #tpu.memory_space<vmem>>, %arg4: memref<32x288xf32, #tpu.memory_space<vmem>>, %arg5: memref<9x1x256xf32, #tpu.memory_space<vmem>>, %arg6: memref<32x1xf32, #tpu.memory_space<vmem>>, %arg7: memref<32x32xf32, #tpu.memory_space<vmem>>, %arg8: memref<32x1xf32, #tpu.memory_space<vmem>>, %arg9: memref<1x32x256xf32, #tpu.memory_space<vmem>>) attributes {dimension_semantics = [#tpu.dimension_semantics<parallel>], iteration_bounds = array<i64: 2>, scalar_prefetch = 0 : i64, scratch_operands = 0 : i64, tpu.core_type = #tpu.core_type<tc>, window_params = [{transform_indices = @transform_0, window_bounds = array<i64: 1, 32, 256>}, {pipeline_mode = #tpu.pipeline_mode<synchronous>, transform_indices = @transform_1, window_bounds = array<i64: 32, 32>}, {pipeline_mode = #tpu.pipeline_mode<synchronous>, transform_indices = @transform_2, window_bounds = array<i64: 32, 1>}, {pipeline_mode = #tpu.pipeline_mode<synchronous>, transform_indices = @transform_3, window_bounds = array<i64: 32, 288>}, {pipeline_mode = #tpu.pipeline_mode<synchronous>, transform_indices = @transform_4, window_bounds = array<i64: 9, 1, 256>}, {pipeline_mode = #tpu.pipeline_mode<synchronous>, transform_indices = @transform_5, window_bounds = array<i64: 32, 1>}, {pipeline_mode = #tpu.pipeline_mode<synchronous>, transform_indices = @transform_6, window_bounds = array<i64: 32, 32>}, {pipeline_mode = #tpu.pipeline_mode<synchronous>, transform_indices = @transform_7, window_bounds = array<i64: 32, 1>}, {transform_indices = @transform_8, window_bounds = array<i64: 1, 32, 256>}]} {
    %c0 = arith.constant 0 : index
    %c0_0 = arith.constant 0 : index
    %c0_1 = arith.constant 0 : index
    %0 = vector.load %arg1[%c0, %c0_0, %c0_1] : memref<1x32x256xf32, #tpu.memory_space<vmem>>, vector<1x32x256xf32>
    %1 = vector.shape_cast %0 : vector<1x32x256xf32> to vector<32x256xf32>
    %c0_2 = arith.constant 0 : index
    %c0_3 = arith.constant 0 : index
    %2 = vector.load %arg2[%c0_2, %c0_3] : memref<32x32xf32, #tpu.memory_space<vmem>>, vector<32x32xf32>
    %cst = arith.constant dense<0.000000e+00> : vector<32x256xf32>
    %3 = tpu.matmul %2, %1, %cst {dimension_numbers = #tpu.dot_dimension_numbers<[1], [0], [0], [1], [0, 0, 1, 1], [], []>} : vector<32x32xf32>, vector<32x256xf32>, vector<32x256xf32> -> vector<32x256xf32>
    %c0_4 = arith.constant 0 : index
    %c0_5 = arith.constant 0 : index
    %4 = vector.load %arg3[%c0_4, %c0_5] : memref<32x1xf32, #tpu.memory_space<vmem>>, vector<32x1xf32>
    %5 = vector.broadcast %4 : vector<32x1xf32> to vector<32x256xf32>
    %6 = arith.addf %3, %5 : vector<32x256xf32>
    %cst_6 = arith.constant 0.000000e+00 : f32
    %7 = vector.broadcast %cst_6 : f32 to vector<32x256xf32>
    %8 = arith.maximumf %6, %7 : vector<32x256xf32>
    %c17_i32 = arith.constant 17 : i32
    %9 = tpu.dynamic_rotate %8 by %c17_i32 dim 1 : vector<32x256xf32>, i32 -> vector<32x256xf32>
    %c0_7 = arith.constant 0 : index
    %c0_8 = arith.constant 0 : index
    %c0_9 = arith.constant 0 : index
    %10 = vector.load %arg5[%c0_7, %c0_8, %c0_9] : memref<9x1x256xf32, #tpu.memory_space<vmem>>, vector<1x1x256xf32>
    %11 = vector.shape_cast %10 : vector<1x1x256xf32> to vector<1x256xf32>
    %12 = vector.broadcast %11 : vector<1x256xf32> to vector<32x256xf32>
    %13 = arith.mulf %9, %12 : vector<32x256xf32>
    %c16_i32 = arith.constant 16 : i32
    %14 = tpu.dynamic_rotate %8 by %c16_i32 dim 1 : vector<32x256xf32>, i32 -> vector<32x256xf32>
    %c1 = arith.constant 1 : index
    %c0_10 = arith.constant 0 : index
    %c0_11 = arith.constant 0 : index
    %15 = vector.load %arg5[%c1, %c0_10, %c0_11] : memref<9x1x256xf32, #tpu.memory_space<vmem>>, vector<1x1x256xf32>
    %16 = vector.shape_cast %15 : vector<1x1x256xf32> to vector<1x256xf32>
    %17 = vector.broadcast %16 : vector<1x256xf32> to vector<32x256xf32>
    %18 = arith.mulf %14, %17 : vector<32x256xf32>
    %c15_i32 = arith.constant 15 : i32
    %19 = tpu.dynamic_rotate %8 by %c15_i32 dim 1 : vector<32x256xf32>, i32 -> vector<32x256xf32>
    %c2 = arith.constant 2 : index
    %c0_12 = arith.constant 0 : index
    %c0_13 = arith.constant 0 : index
    %20 = vector.load %arg5[%c2, %c0_12, %c0_13] : memref<9x1x256xf32, #tpu.memory_space<vmem>>, vector<1x1x256xf32>
    %21 = vector.shape_cast %20 : vector<1x1x256xf32> to vector<1x256xf32>
    %22 = vector.broadcast %21 : vector<1x256xf32> to vector<32x256xf32>
    %23 = arith.mulf %19, %22 : vector<32x256xf32>
    %c1_i32 = arith.constant 1 : i32
    %24 = tpu.dynamic_rotate %8 by %c1_i32 dim 1 : vector<32x256xf32>, i32 -> vector<32x256xf32>
    %c3 = arith.constant 3 : index
    %c0_14 = arith.constant 0 : index
    %c0_15 = arith.constant 0 : index
    %25 = vector.load %arg5[%c3, %c0_14, %c0_15] : memref<9x1x256xf32, #tpu.memory_space<vmem>>, vector<1x1x256xf32>
    %26 = vector.shape_cast %25 : vector<1x1x256xf32> to vector<1x256xf32>
    %27 = vector.broadcast %26 : vector<1x256xf32> to vector<32x256xf32>
    %28 = arith.mulf %24, %27 : vector<32x256xf32>
    %c255_i32 = arith.constant 255 : i32
    %29 = tpu.dynamic_rotate %8 by %c255_i32 dim 1 : vector<32x256xf32>, i32 -> vector<32x256xf32>
    %c5 = arith.constant 5 : index
    %c0_16 = arith.constant 0 : index
    %c0_17 = arith.constant 0 : index
    %30 = vector.load %arg5[%c5, %c0_16, %c0_17] : memref<9x1x256xf32, #tpu.memory_space<vmem>>, vector<1x1x256xf32>
    %31 = vector.shape_cast %30 : vector<1x1x256xf32> to vector<1x256xf32>
    %32 = vector.broadcast %31 : vector<1x256xf32> to vector<32x256xf32>
    %33 = arith.mulf %29, %32 : vector<32x256xf32>
    %c241_i32 = arith.constant 241 : i32
    %34 = tpu.dynamic_rotate %8 by %c241_i32 dim 1 : vector<32x256xf32>, i32 -> vector<32x256xf32>
    %c6 = arith.constant 6 : index
    %c0_18 = arith.constant 0 : index
    %c0_19 = arith.constant 0 : index
    %35 = vector.load %arg5[%c6, %c0_18, %c0_19] : memref<9x1x256xf32, #tpu.memory_space<vmem>>, vector<1x1x256xf32>
    %36 = vector.shape_cast %35 : vector<1x1x256xf32> to vector<1x256xf32>
    %37 = vector.broadcast %36 : vector<1x256xf32> to vector<32x256xf32>
    %38 = arith.mulf %34, %37 : vector<32x256xf32>
    %c240_i32 = arith.constant 240 : i32
    %39 = tpu.dynamic_rotate %8 by %c240_i32 dim 1 : vector<32x256xf32>, i32 -> vector<32x256xf32>
    %c7 = arith.constant 7 : index
    %c0_20 = arith.constant 0 : index
    %c0_21 = arith.constant 0 : index
    %40 = vector.load %arg5[%c7, %c0_20, %c0_21] : memref<9x1x256xf32, #tpu.memory_space<vmem>>, vector<1x1x256xf32>
    %41 = vector.shape_cast %40 : vector<1x1x256xf32> to vector<1x256xf32>
    %42 = vector.broadcast %41 : vector<1x256xf32> to vector<32x256xf32>
    %43 = arith.mulf %39, %42 : vector<32x256xf32>
    %c239_i32 = arith.constant 239 : i32
    %44 = tpu.dynamic_rotate %8 by %c239_i32 dim 1 : vector<32x256xf32>, i32 -> vector<32x256xf32>
    %c8 = arith.constant 8 : index
    %c0_22 = arith.constant 0 : index
    %c0_23 = arith.constant 0 : index
    %45 = vector.load %arg5[%c8, %c0_22, %c0_23] : memref<9x1x256xf32, #tpu.memory_space<vmem>>, vector<1x1x256xf32>
    %46 = vector.shape_cast %45 : vector<1x1x256xf32> to vector<1x256xf32>
    %47 = vector.broadcast %46 : vector<1x256xf32> to vector<32x256xf32>
    %48 = arith.mulf %44, %47 : vector<32x256xf32>
    %49 = tpu.concatenate %13, %18, %23, %28, %8, %33, %38, %43, %48 in 0 : vector<32x256xf32>, vector<32x256xf32>, vector<32x256xf32>, vector<32x256xf32>, vector<32x256xf32>, vector<32x256xf32>, vector<32x256xf32>, vector<32x256xf32>, vector<32x256xf32> -> vector<288x256xf32>
    %c0_24 = arith.constant 0 : index
    %c0_25 = arith.constant 0 : index
    %50 = vector.load %arg4[%c0_24, %c0_25] : memref<32x288xf32, #tpu.memory_space<vmem>>, vector<32x288xf32>
    %cst_26 = arith.constant dense<0.000000e+00> : vector<32x256xf32>
    %51 = tpu.matmul %50, %49, %cst_26 {dimension_numbers = #tpu.dot_dimension_numbers<[1], [0], [0], [1], [0, 0, 1, 1], [], []>} : vector<32x288xf32>, vector<288x256xf32>, vector<32x256xf32> -> vector<32x256xf32>
    %c0_27 = arith.constant 0 : index
    %c0_28 = arith.constant 0 : index
    %52 = vector.load %arg6[%c0_27, %c0_28] : memref<32x1xf32, #tpu.memory_space<vmem>>, vector<32x1xf32>
    %53 = vector.broadcast %52 : vector<32x1xf32> to vector<32x256xf32>
    %54 = arith.addf %51, %53 : vector<32x256xf32>
    %cst_29 = arith.constant 0.000000e+00 : f32
    %55 = vector.broadcast %cst_29 : f32 to vector<32x256xf32>
    %56 = arith.maximumf %54, %55 : vector<32x256xf32>
    %c0_30 = arith.constant 0 : index
    %c0_31 = arith.constant 0 : index
    %57 = vector.load %arg7[%c0_30, %c0_31] : memref<32x32xf32, #tpu.memory_space<vmem>>, vector<32x32xf32>
    %cst_32 = arith.constant dense<0.000000e+00> : vector<32x256xf32>
    %58 = tpu.matmul %57, %56, %cst_32 {dimension_numbers = #tpu.dot_dimension_numbers<[1], [0], [0], [1], [0, 0, 1, 1], [], []>} : vector<32x32xf32>, vector<32x256xf32>, vector<32x256xf32> -> vector<32x256xf32>
    %c0_33 = arith.constant 0 : index
    %c0_34 = arith.constant 0 : index
    %59 = vector.load %arg8[%c0_33, %c0_34] : memref<32x1xf32, #tpu.memory_space<vmem>>, vector<32x1xf32>
    %60 = vector.broadcast %59 : vector<32x1xf32> to vector<32x256xf32>
    %61 = arith.addf %58, %60 : vector<32x256xf32>
    %c0_35 = arith.constant 0 : index
    %c0_36 = arith.constant 0 : index
    %c0_37 = arith.constant 0 : index
    %62 = vector.load %arg1[%c0_35, %c0_36, %c0_37] : memref<1x32x256xf32, #tpu.memory_space<vmem>>, vector<1x32x256xf32>
    %63 = vector.shape_cast %62 : vector<1x32x256xf32> to vector<32x256xf32>
    %64 = arith.addf %61, %63 : vector<32x256xf32>
    %cst_38 = arith.constant 0.000000e+00 : f32
    %65 = vector.broadcast %cst_38 : f32 to vector<32x256xf32>
    %66 = arith.maximumf %64, %65 : vector<32x256xf32>
    %c0_39 = arith.constant 0 : index
    %c0_40 = arith.constant 0 : index
    %c0_41 = arith.constant 0 : index
    %67 = vector.load %arg9[%c0_39, %c0_40, %c0_41] : memref<1x32x256xf32, #tpu.memory_space<vmem>>, vector<1x32x256xf32>
    %68 = vector.shape_cast %67 : vector<1x32x256xf32> to vector<32x256xf32>
    %69 = vector.shape_cast %66 : vector<32x256xf32> to vector<1x32x256xf32>
    tpu.vector_store %arg9[%c0_39, %c0_40, %c0_41], %69 {strides = array<i32>} : memref<1x32x256xf32, #tpu.memory_space<vmem>>, vector<1x32x256xf32>,
    return
  }
  func.func @transform_0(%arg0: i32) -> (i32, i32, i32) {
    %c0_i32 = arith.constant 0 : i32
    %c0_i32_0 = arith.constant 0 : i32
    %c0_i32_1 = arith.constant 0 : i32
    return %arg0, %c0_i32, %c0_i32_0 : i32, i32, i32
  }
  func.func @transform_1(%arg0: i32) -> (i32, i32) {
    %c0_i32 = arith.constant 0 : i32
    %c0_i32_0 = arith.constant 0 : i32
    %c0_i32_1 = arith.constant 0 : i32
    return %c0_i32, %c0_i32_0 : i32, i32
  }
  func.func @transform_2(%arg0: i32) -> (i32, i32) {
    %c0_i32 = arith.constant 0 : i32
    %c0_i32_0 = arith.constant 0 : i32
    %c0_i32_1 = arith.constant 0 : i32
    return %c0_i32, %c0_i32_0 : i32, i32
  }
  func.func @transform_3(%arg0: i32) -> (i32, i32) {
    %c0_i32 = arith.constant 0 : i32
    %c0_i32_0 = arith.constant 0 : i32
    %c0_i32_1 = arith.constant 0 : i32
    return %c0_i32, %c0_i32_0 : i32, i32
  }
  func.func @transform_4(%arg0: i32) -> (i32, i32, i32) {
    %c0_i32 = arith.constant 0 : i32
    %c0_i32_0 = arith.constant 0 : i32
    %c0_i32_1 = arith.constant 0 : i32
    %c0_i32_2 = arith.constant 0 : i32
    return %c0_i32, %c0_i32_0, %c0_i32_1 : i32, i32, i32
  }
  func.func @transform_5(%arg0: i32) -> (i32, i32) {
    %c0_i32 = arith.constant 0 : i32
    %c0_i32_0 = arith.constant 0 : i32
    %c0_i32_1 = arith.constant 0 : i32
    return %c0_i32, %c0_i32_0 : i32, i32
  }
  func.func @transform_6(%arg0: i32) -> (i32, i32) {
    %c0_i32 = arith.constant 0 : i32
    %c0_i32_0 = arith.constant 0 : i32
    %c0_i32_1 = arith.constant 0 : i32
    return %c0_i32, %c0_i32_0 : i32, i32
  }
  func.func @transform_7(%arg0: i32) -> (i32, i32) {
    %c0_i32 = arith.constant 0 : i32
    %c0_i32_0 = arith.constant 0 : i32
    %c0_i32_1 = arith.constant 0 : i32
    return %c0_i32, %c0_i32_0 : i32, i32
  }
  func.func @transform_8(%arg0: i32) -> (i32, i32, i32) {
    %c0_i32 = arith.constant 0 : i32
    %c0_i32_0 = arith.constant 0 : i32
    %c0_i32_1 = arith.constant 0 : i32
    return %arg0, %c0_i32, %c0_i32_0 : i32, i32, i32
  }
}

</mosaic_0001>

<bundles_post_ra>
// kernel: tpu_custom_call.1
= control target key start
LH: loop header
LB: loop body
LE: loop exit
PB: predicated region body
PF: predicated region fallthrough
CT: control target
= control target key end

     0   :  { %13 = vsyncpa [#allocation3], 0  ;;  %s2751_s0 = inlined_call_operand.hbm [shape: f32[2,32,256], index: 0, kind: input, shape index: {}]   ;;  %s2752_s1 = inlined_call_operand.hbm [shape: f32[32,32], index: 1, kind: input, shape index: {}]   ;;  %s2753_s2 = inlined_call_operand.vmem [shape: f32[32,1], index: 2, kind: input, shape index: {}]   ;;  %s2754_s3 = inlined_call_operand.vmem [shape: f32[32,288], index: 3, kind: input, shape index: {}]   ;;  %s2755_s4 = inlined_call_operand.vmem [shape: f32[9,1,256], index: 4, kind: input, shape index: {}]   ;;  %s2756_s5 = inlined_call_operand.vmem [shape: f32[32,1], index: 5, kind: input, shape index: {}]   ;;  %s2757_s6 = inlined_call_operand.hbm [shape: f32[32,32], index: 6, kind: input, shape index: {}]   ;;  %s2758_s7 = inlined_call_operand.vmem [shape: f32[32,1], index: 7, kind: input, shape index: {}]   ;;  %s2759_s8 = inlined_call_operand.hbm [shape: f32[2,32,256], index: 8, kind: output, shape index: {}]  }
   0x1   :  { %15 = vsyncpa [#allocation3 + $0x1], 0 }
   0x2   :  { %16 = vsyncpa [#allocation6], 0 }
   0x3   :  { %17 = vsyncpa [#allocation4], 0 }
   0x4   :  { %19 = vsyncpa [#allocation4 + $0x1], 0  ;;  %s1818_s27 = smov 0   ;;  %s1820_s28 = smov 0  }
   0x5   :  { %s1822_s29 = smov 0   ;;  %s1824_s30 = smov 0  }
   0x6 LB: > { %s1839_s9 = sadd.s32 4294967295, %s1752_s30   ;;  %s1361_s10 = sadd.s32 4294967294, %s1752_s30   ;;  %s1752_s30 = sphi %s1824_s30, %s2792_s30   ;;  %s1748_s29 = sphi %s1822_s29, %s2791_s29   ;;  %s1744_s28 = sphi %s1820_s28, %s2790_s28   ;;  %s1740_s27 = sphi %s1818_s27, %s2789_s27  }
   0x7   : > { %p45_p0 = scmp.ne.s32.totalorder %s1744_s28, %s1740_s27  ;;  %p2760_p1 = scmp.eq.s32.totalorder %s1839_s9, 0 }
   0x8   : > { %p222_p3 = scmp.eq.s32.totalorder %s1361_s10, 1  ;;  %p1362_p5 = scmp.ge.s32.totalorder %s1752_s30, 1 }
   0x9   : > { %p1848_p4 = por %p2760_p1, %p45_p0  ;;  %p229_p7 = scmp.lt.s32.totalorder %s1752_s30, 3 }
   0xa   : > { %p1853_p6 = por %p222_p3, %p45_p0  ;;  %s1754_s14 = smov [#allocation5]  }
   0xb   : > { %s2766_s11 = scalar_select %p1848_p4, 1, 0 }
   0xc   : > { %s2767_s12 = scalar_select %p1853_p6, 1, 0 }
   0xd   : > { %p1858_p8 = pnand %p1362_p5, %p229_p7  ;;  %s241_s15 = sshll.u32 %s1754_s14, 4  ;;  %s1862_s15 = int_to_ptr.vmem [resolvable:$true] %s241_s15 }
   0xe   : > { %s1755_s17 = smov [#allocation7]   ;;  %s1596_s21 = scalar_lea.hbm %s2752_s1, 512 }
   0xf   : > { %p1516_p9 = pneg %p1858_p8  ;;  %s266_s18 = sshll.u32 %s1755_s17, 4  ;;  %s1873_s18 = int_to_ptr.vmem [resolvable:$true] %s266_s18 }
  0x10   : > { %p1597_p12 = scmp.ne.s32.totalorder %s2752_s1, %s1596_s21  ;;  %p1603_p5 = scmp.lt.u32.totalorder %s1596_s21, %s2752_s1 }
  0x11   : > { %p1869_p11 = pnand %p1516_p9, %p2760_p1 }
  0x13   : > { %p1598_p13 = pneg %p1869_p11 }
  0x15   : > { %p1599_p0 = pnand %p1598_p13, %p1597_p12 }
  0x17   : > { %p1600_p3 = pneg %p1599_p0 }
  0x19   : > { %p1605_p7 = pnand %p1603_p5, %p1600_p3 }
  0x1b   : > { %1608 = shalt.err (!%p1605_p7)
}
  0x1c   : > { %s1609_s26 = scalar_lea.vmem %s1862_s15, 512  ;;  %p1617_p2 = scmp.lt.s32.totalorder %s1862_s15, %s1862_s15 }
  0x1d   : > { %p1610_p9 = scmp.ne.s32.totalorder %s1862_s15, %s1609_s26  ;;  %p1618_p12 = scmp.lt.s32.totalorder %s1609_s26, %s1609_s26 }
  0x1f   : > { %p1612_p10 = pnand %p1610_p9, %p1598_p13  ;;  %p1619_p0 = por %p1618_p12, %p1617_p2 }
  0x21   : > { %p1613_p1 = pneg %p1612_p10 }
  0x23   : > { %p1620_p6 = pnand %p1619_p0, %p1613_p1 }
  0x25   : > { %1623 = shalt.err (!%p1620_p6)
}
  0x26   : > { %s1756_s10 = smov 128   ;;  %s1757_s14 = smov 8  }
  0x27   : > { %1519 = dma.hbm_to_vmem [thread:$0]  (!%p1869_p11), %s2752_s1, 512, %s1862_s15, [#allocation6], %s1756_s10, %s1756_s10, %s1757_s14  }
  0x28   : > { %s1624_s22 = scalar_lea.hbm %s2757_s6, 512 }
  0x29   : > { %p1625_p2 = scmp.ne.s32.totalorder %s2757_s6, %s1624_s22  ;;  %p1631_p10 = scmp.lt.u32.totalorder %s1624_s22, %s2757_s6 }
  0x2b   : > { %p1627_p1 = pnand %p1625_p2, %p1598_p13 }
  0x2d   : > { %p1628_p6 = pneg %p1627_p1 }
  0x2f   : > { %p1633_p3 = pnand %p1631_p10, %p1628_p6 }
  0x31   : > { %1636 = shalt.err (!%p1633_p3)
}
  0x32   : > { %s1637_s15 = scalar_lea.vmem %s1873_s18, 512  ;;  %p1645_p12 = scmp.lt.s32.totalorder %s1873_s18, %s1873_s18 }
  0x33   : > { %p1638_p5 = scmp.ne.s32.totalorder %s1873_s18, %s1637_s15  ;;  %p1646_p0 = scmp.lt.s32.totalorder %s1637_s15, %s1637_s15 }
  0x35   : > { %p1640_p7 = pnand %p1638_p5, %p1598_p13  ;;  %p1647_p2 = por %p1646_p0, %p1645_p12 }
  0x37   : > { %p1641_p9 = pneg %p1640_p7 }
  0x39   : > { %p1648_p1 = pnand %p1647_p2, %p1641_p9 }
  0x3b   : > { %1651 = shalt.err (!%p1648_p1)
}
  0x3c   : > { %1522 = dma.hbm_to_vmem [thread:$0]  (!%p1869_p11), %s2757_s6, 512, %s1873_s18, [#allocation6], %s1756_s10, %s1756_s10, %s1757_s14  }
  0x3d   : > { %s1928_s20 = sadd.s32 1, %s1752_s30   ;;  %s32_s16 = sadd.s32 1, %s1748_s29 }
  0x3e   : > { %s29_s21 = ssub.s32 %s1752_s30, %s1928_s20  ;;  %p39_p13 = scmp.ne.s32.totalorder %s1748_s29, %s1744_s28 }
  0x3f   : > { %p30_p6 = scmp.eq.s32.totalorder %s29_s21, 0  ;;  %p40_p10 = scmp.eq.s32.totalorder %s1752_s30, 0 }
  0x40   : > { %p2770_p3 = scmp.eq.s32.totalorder %s1839_s9, 1  ;;  %p1533_p7 = scmp.lt.s32.totalorder %s1752_s30, 2 }
  0x41   : > { %s1944_s23 = scalar_select %p30_p6, %s1748_s29, %s32_s16  }
  0x42   : > { %p1938_p5 = por %p2770_p3, %p39_p13  ;;  %p41_p9 = por %p40_p10, %p39_p13 }
  0x43   : > { %s283_s24 = sand.u32 1, %s1748_s29   ;;  %s1398_s18 = sshll.u32 %s1752_s30, 10 }
  0x44   : > { %s2771_s22 = scalar_select %p1938_p5, 1, 0 }
  0x45   : > { %s1366_s25 = sshll.u32 %s283_s24, 6  ;;  %s1951_s26 = scalar_lea.hbm %s2751_s0, %s1398_s18 }
  0x46   : > { %s287_s15 = scalar_lea.vmem [#allocation2], %s1366_s25  ;;  %p1955_p11 = pnand %p1533_p7, %p41_p9 }
  0x47   : > { %s294_s17 = sshll.u32 %s287_s15, 4  ;;  %s1959_s16 = scalar_lea.sflag [#allocation3], %s283_s24  ;;  %s1953_s17 = int_to_ptr.vmem [resolvable:$true] %s294_s17 }
  0x48   : > { %s1652_s21 = scalar_lea.hbm %s1951_s26, 1024  ;;  %p1654_p0 = pneg %p1955_p11 }
  0x49   : > { %p1653_p12 = scmp.ne.s32.totalorder %s1951_s26, %s1652_s21  ;;  %s1657_s10 = scalar_lea.hbm %s2751_s0, 2048 }
  0x4a   : > { %p1658_p13 = scmp.lt.u32.totalorder %s1951_s26, %s2751_s0  ;;  %p1659_p6 = scmp.lt.u32.totalorder %s1657_s10, %s1652_s21 }
  0x4b   : > { %p1655_p2 = pnand %p1654_p0, %p1653_p12  ;;  %p1661_p3 = scmp.lt.u32.totalorder %s1652_s21, %s1951_s26 }
  0x4c   : > { %p1660_p10 = por %p1659_p6, %p1658_p13 }
  0x4d   : > { %p1656_p1 = pneg %p1655_p2 }
  0x4e   : > { %p1662_p7 = por %p1661_p3, %p1660_p10 }
  0x50   : > { %p1663_p9 = pnand %p1662_p7, %p1656_p1 }
  0x52   : > { %1666 = shalt.err (!%p1663_p9)
}
  0x53   : > { %s1667_s24 = scalar_lea.vmem %s1953_s17, 1024  ;;  %s1758_s25 = smov [#allocation2]  }
  0x54   : > { %p1668_p12 = scmp.ne.s32.totalorder %s1953_s17, %s1667_s24  ;;  %s1672_s18 = sshll.u32 %s1758_s25, 4  ;;  %s1673_s18 = int_to_ptr.vmem [resolvable:$false] %s1672_s18 }
  0x55   : > { %s1674_s14 = scalar_lea.vmem %s1673_s18, 2048  ;;  %p1675_p4 = scmp.lt.s32.totalorder %s1953_s17, %s1673_s18 }
  0x56   : > { %p1670_p2 = pnand %p1668_p12, %p1654_p0  ;;  %p1676_p13 = scmp.lt.s32.totalorder %s1674_s14, %s1667_s24 }
  0x58   : > { %p1671_p5 = pneg %p1670_p2  ;;  %p1677_p6 = por %p1676_p13, %p1675_p4 }
  0x5a   : > { %p1678_p10 = pnand %p1677_p6, %p1671_p5 }
  0x5c   : > { %1681 = shalt.err (!%p1678_p10)
}
  0x5d   : > { %s1759_s21 = smov 256   ;;  %s1760_s10 = smov 16  }
  0x5e   : > { %1526 = dma.hbm_to_vmem [thread:$0]  (!%p1955_p11), %s1951_s26, 1024, %s1953_s17, %s1959_s16, %s1759_s21, %s1759_s21, %s1760_s10  }
  0x5f   : > { %306 = sbr.rel (%p1858_p8) target bundleno = 1069 (0x42d), region = 52 }
  0x66   : > { %s1990_s15 = sand.u32 1, %s1744_s28   ;;  %p2773_p4 = scmp.ne.s32.totalorder %s2766_s11, 0 }
  0x67   : > { %s1370_s24 = sshll.u32 %s1990_s15, 6  ;;  %s309_s25 = scalar_lea.sflag [#allocation3], %s1990_s15 }
  0x68   : > { %s1996_s18 = scalar_lea.vmem [#allocation2], %s1370_s24 }
  0x69   : > { %1727 = dma.done.wait (%p2773_p4), %s309_s25, 1024  }
  0x6a   : > { %1729 = vsyncadd (%p2773_p4), %s309_s25, 4294966272  ;;  %p2774_p5 = scmp.eq.s32.totalorder %s1839_s9, 0 }
  0x6c   : > { %1731 = dma.done.wait (%p2774_p5), [#allocation6], 1024   ;;  %p2775_p8 = pmov %p2774_p5 }
  0x6d   : > { %v2763_v0 = vmov 0.0   ;;  %v1762_v1 = vmov 0   ;;  %v354_v2 = vld [vmem:[%s1996_s18 + $0x8] sm:$0xff]  ;;  %v356_v3 = vld [vmem:[%s1996_s18 + $0x18] sm:$0xff]  ;;  %v353_v4 = vld [vmem:[%s1996_s18] sm:$0xff]  ;;  %vm389_vm0 = vcmask 261120   ;;  %v515_v59 = vlaneseq }
  0x6e   : > { %1733 = vsyncadd (%p2775_p8), [#allocation6], 4294966272  ;;  %466 = vmatprep.mubr.f32.mxu0 %v2763_v0  ;;  %1586 = vset.pattern.permute.xlu0 %v1762_v1  ;;  %v1400_v5 = vpack.c.bf16 %v356_v3, %v354_v2  ;;  %v355_v6 = vld [vmem:[%s1996_s18 + $0x10] sm:$0xff]  ;;  %v358_v7 = vld [vmem:[%s1996_s18 + $0x28] sm:$0xff]  ;;  %s1763_s10 = smov 17   ;;  %s1764_s25 = smov 16  }
  0x6f   : > { %1587 = vset.pattern.permute.xlu1 %v1762_v1  ;;  %v360_v8 = vld [vmem:[%s1996_s18 + $0x38] sm:$0xff]  ;;  %v1402_v9 = vpack.c.bf16 %v355_v6, %v353_v4  ;;  %v357_v11 = vld [vmem:[%s1996_s18 + $0x20] sm:$0xff]  ;;  %v359_v12 = vld [vmem:[%s1996_s18 + $0x30] sm:$0xff]  ;;  %s1765_s11 = smov 15   ;;  %s1766_s13 = smov 1   ;;  %v529_v1 = vshrl.u32 %v515_v59, 7 }
  0x70   : > { %v1404_v10 = vpack.c.bf16 %v360_v8, %v358_v7  ;;  %1401 = vmatprep.subr.bf16.mxu0 %v1400_v5  ;;  %v1406_v13 = vpack.c.bf16 %v359_v12, %v357_v11  ;;  %v365_v14 = vld [vmem:[%s2753_s2] sm:$0xff]  ;;  %v367_v15 = vld [vmem:[%s2753_s2 + $0x10] sm:$0xff]  ;;  %v366_v16 = vld [vmem:[%s2753_s2 + $0x8] sm:$0xff]  ;;  %s1767_s26 = smov 127   ;;  %s1768_s17 = smov 113   ;;  %v2199_v6 = vand.u32 127, %v515_v59 }
  0x71   : > { %1403 = vmatpush1.bf16.msra.mxu0 %v1402_v9  ;;  %371 = vperm.xlu0 %1586, %v365_v14   ;;  %v368_v17 = vld [vmem:[%s2753_s2 + $0x18] sm:$0xff]  ;;  %v361_v18 = vld [vmem:[#allocation5] sm:$0xff]  ;;  %v362_v19 = vld [vmem:[#allocation5 + $0x8] sm:$0xff]  ;;  %s1769_s19 = smov 112   ;;  %s1770_s16 = smov 111   ;;  %v2201_v7 = vsub.s32 0, %v529_v1 }
  0x72   : > { %1405 = vmatprep.subr.bf16.mxu0 %v1404_v10  ;;  %381 = vperm.xlu1 %1587, %v367_v15   ;;  %v363_v20 = vld [vmem:[#allocation5 + $0x10] sm:$0xff]  ;;  %v364_v21 = vld [vmem:[#allocation5 + $0x18] sm:$0xff]  ;;  %v869_v53 = vld [vmem:[%s2754_s3 + $0x8] sm:$0xff]  ;;  %v2203_v8 = vsub.s32 1, %v529_v1  ;;  %vm517_vm1 = vcmp.lt.s32.totalorder %v2199_v6, 17  ;;  %vm562_vm2 = vcmp.lt.s32.totalorder %v2199_v6, 16 }
  0x73   : > { %980 = vmatprep.mubr.f32.mxu1 %v869_v53  ;;  %v880_v56 = vld [vmem:[%s2756_s5] sm:$0xff]  ;;  %v881_v60 = vld [vmem:[%s2756_s5 + $0x8] sm:$0xff]  ;;  %v882_v61 = vld [vmem:[%s2756_s5 + $0x10] sm:$0xff]  ;;  %vm608_vm3 = vcmp.lt.s32.totalorder %v2199_v6, 15  ;;  %vm654_vm4 = vcmp.lt.s32.totalorder %v2199_v6, 1  ;;  %vm700_vm5 = vcmp.lt.s32.totalorder %v2199_v6, 127 }
  0x74   : > { %v883_v2 = vld [vmem:[%s2756_s5 + $0x18] sm:$0xff]  ;;  %v1106_v3 = vld [vmem:[%s2758_s7] sm:$0xff]  ;;  %v1107_v10 = vld [vmem:[%s2758_s7 + $0x8] sm:$0xff]  ;;  %vm746_vm6 = vcmp.lt.s32.totalorder %v2199_v6, 113  ;;  %vm838_vm7 = vcmp.lt.s32.totalorder %v2199_v6, 111  ;;  %vm792_vm8 = vcmp.lt.s32.totalorder %v2199_v6, 112 }
  0x75   : > { %1407 = vmatpush1.bf16.msra.mxu0 %v1406_v13  ;;  %376 = vperm.xlu0 %1586, %v366_v16   ;;  %v526_v9 = vld [vmem:[%s2755_s4] sm:$0x3]  ;;  %v1108_v11 = vld [vmem:[%s2758_s7 + $0x10] sm:$0xff]  ;;  %v2223_v15 = vld [vmem:[%s2755_s4 + $0x2] sm:$0x3]  ;;  %p2786_p0 = scmp.ne.s32.totalorder %s2771_s22, 0 }
  0x76   : > { %386 = vperm.xlu1 %1587, %v368_v17   ;;  %v2218_v14 = vrot.slane %v526_v9, %v2201_v7  ;;  %v2226_v16 = vrot.slane %v526_v9, %v2203_v8  ;;  %v1381_v1 = vld [vmem:[%s2755_s4 + $0xa] sm:$0x3]  ;;  %v872_v6 = vld [vmem:[%s2754_s3 + $0x20] sm:$0xff] }
  0x78   : > { %1374 = vmatmul.mubr.msk.f32.vlgmr.msra.gmra.mrb[0].mxu0 %vm389_vm0, %v361_v18 }
  0x79   : > { %472 = vmatprep.mubr.f32.mxu0 %v2763_v0 }
  0x7c   : > { %1375 = vmatmul.mubr.msk.f32.gmra.mrb[2].mxu0 %vm389_vm0, %v362_v19  ;;  %v1109_v19 = vld [vmem:[%s2758_s7 + $0x18] sm:$0xff] }
  0x7d   : > { %478 = vmatprep.mubr.f32.mxu0 %v2763_v0 }
  0x80   : > { %1376 = vmatmul.mubr.msk.f32.gmra.mrb[4].mxu0 %vm389_vm0, %v363_v20 }
  0x81   : > { %484 = vmatprep.mubr.f32.mxu0 %v2763_v0 }
  0x84   : > { %1377 = vmatmul.mubr.msk.f32.gmra.mrb[6].mxu0 %vm389_vm0, %v364_v21 }
  0x85   : > { %1069 = vmatprep.mubr.f32.mxu0 %v2763_v0 }
  0xf0   : > { %v372_v22 = vpop.permute.xlu0 %371 }
  0xf1   : > { %v382_v40 = vpop.permute.xlu1 %381 }
  0xf4   : > { %v377_v27 = vpop.permute.xlu0 %376 }
  0xf5   : > { %v387_v42 = vpop.permute.xlu1 %386 }
 0x14b   : > { %v468_v23 = vpop.f32.mrb[0].mxu0 }
 0x14c   : > { %v469_v24 = vadd.f32 %v468_v23, %v372_v22  ;;  %v470_v25 = vpop.f32.mrb[1].mxu0 }
 0x14d   : > { %v471_v36 = vadd.f32 %v470_v25, %v372_v22 }
 0x14e   : > { %v2035_v26 = vmax.f32 %v469_v24, 0.0  ;;  %v2244_v24 = vrot.slane %v2223_v15, %v2201_v7 }
 0x14f   : > { %v474_v28 = vpop.f32.mrb[2].mxu0  ;;  %v2061_v37 = vmax.f32 %v471_v36, 0.0 }
 0x150   : > { %v475_v29 = vadd.f32 %v474_v28, %v377_v27  ;;  %v476_v30 = vpop.f32.mrb[3].mxu0  ;;  %499 = vrot.lane.b32.xlu0 %v2035_v26, %s1763_s10 }
 0x151   : > { %v477_v38 = vadd.f32 %v476_v30, %v377_v27 }
 0x152   : > { %v2039_v31 = vmax.f32 %v475_v29, 0.0 }
 0x153   : > { %v480_v32 = vpop.f32.mrb[4].mxu0  ;;  %v2067_v39 = vmax.f32 %v477_v38, 0.0 }
 0x154   : > { %501 = vrot.lane.b32.xlu1 %v2039_v31, %s1763_s10  ;;  %546 = vrot.lane.b32.xlu0 %v2035_v26, %s1764_s25  ;;  %v482_v33 = vpop.f32.mrb[5].mxu0  ;;  %v481_v41 = vadd.f32 %v480_v32, %v382_v40  ;;  %v1379_v32 = vld [vmem:[%s2755_s4 + $0x4] sm:$0x3] }
 0x155   : > { %v483_v46 = vadd.f32 %v482_v33, %v382_v40  ;;  %v1380_v40 = vld [vmem:[%s2755_s4 + $0x6] sm:$0x3] }
 0x156   : > { %v2081_v43 = vmax.f32 %v481_v41, 0.0  ;;  %v2287_v53 = vrot.slane %v1380_v40, %v2201_v7 }
 0x157   : > { %v486_v34 = vpop.f32.mrb[6].mxu0  ;;  %v2109_v47 = vmax.f32 %v483_v46, 0.0  ;;  %v2277_v46 = vrot.slane %v1379_v32, %v2203_v8 }
 0x158   : > { %548 = vrot.lane.b32.xlu1 %v2039_v31, %s1764_s25  ;;  %592 = vrot.lane.b32.xlu0 %v2035_v26, %s1765_s11  ;;  %v488_v35 = vpop.f32.mrb[7].mxu0  ;;  %v487_v44 = vadd.f32 %v486_v34, %v387_v42 }
 0x159   : > { %v489_v48 = vadd.f32 %v488_v35, %v387_v42 }
 0x15a   : > { %v2091_v45 = vmax.f32 %v487_v44, 0.0  ;;  %v2274_v44 = vrot.slane %v1379_v32, %v2201_v7 }
 0x15b   : > { %v2115_v49 = vmax.f32 %v489_v48, 0.0 }
 0x15c   : > { %594 = vrot.lane.b32.xlu1 %v2039_v31, %s1765_s11  ;;  %638 = vrot.lane.b32.xlu0 %v2035_v26, %s1766_s13 }
 0x160   : > { %640 = vrot.lane.b32.xlu1 %v2039_v31, %s1766_s13  ;;  %684 = vrot.lane.b32.xlu0 %v2035_v26, %s1767_s26 }
 0x164   : > { %686 = vrot.lane.b32.xlu1 %v2039_v31, %s1767_s26  ;;  %730 = vrot.lane.b32.xlu0 %v2035_v26, %s1768_s17 }
 0x168   : > { %732 = vrot.lane.b32.xlu1 %v2039_v31, %s1768_s17  ;;  %507 = vrot.lane.b32.xlu0 %v2061_v37, %s1763_s10 }
 0x16c   : > { %509 = vrot.lane.b32.xlu1 %v2067_v39, %s1763_s10  ;;  %554 = vrot.lane.b32.xlu0 %v2061_v37, %s1764_s25 }
 0x170   : > { %556 = vrot.lane.b32.xlu1 %v2067_v39, %s1764_s25  ;;  %600 = vrot.lane.b32.xlu0 %v2061_v37, %s1765_s11 }
 0x174   : > { %602 = vrot.lane.b32.xlu1 %v2067_v39, %s1765_s11  ;;  %646 = vrot.lane.b32.xlu0 %v2061_v37, %s1766_s13 }
 0x178   : > { %648 = vrot.lane.b32.xlu1 %v2067_v39, %s1766_s13  ;;  %692 = vrot.lane.b32.xlu0 %v2061_v37, %s1767_s26 }
 0x17c   : > { %694 = vrot.lane.b32.xlu1 %v2067_v39, %s1767_s26  ;;  %503 = vrot.lane.b32.xlu0 %v2081_v43, %s1763_s10 }
 0x180   : > { %505 = vrot.lane.b32.xlu1 %v2091_v45, %s1763_s10  ;;  %550 = vrot.lane.b32.xlu0 %v2081_v43, %s1764_s25 }
 0x184   : > { %552 = vrot.lane.b32.xlu1 %v2091_v45, %s1764_s25  ;;  %596 = vrot.lane.b32.xlu0 %v2081_v43, %s1765_s11 }
 0x188   : > { %598 = vrot.lane.b32.xlu1 %v2091_v45, %s1765_s11  ;;  %642 = vrot.lane.b32.xlu0 %v2081_v43, %s1766_s13 }
 0x18c   : > { %644 = vrot.lane.b32.xlu1 %v2091_v45, %s1766_s13  ;;  %688 = vrot.lane.b32.xlu0 %v2081_v43, %s1767_s26 }
 0x190   : > { %690 = vrot.lane.b32.xlu1 %v2091_v45, %s1767_s26  ;;  %511 = vrot.lane.b32.xlu0 %v2109_v47, %s1763_s10 }
 0x194   : > { %513 = vrot.lane.b32.xlu1 %v2115_v49, %s1763_s10  ;;  %738 = vrot.lane.b32.xlu0 %v2061_v37, %s1768_s17  ;;  %s2683_s10 = scalar_lea.vmem [#allocation8], %s1370_s24 }
 0x195   : > { %s1269_s24 = sshll.u32 %s2683_s10, 4  ;;  %s2699_s24 = int_to_ptr.vmem [resolvable:$true] %s1269_s24 }
 0x196   : > { %s1682_s14 = scalar_lea.vmem %s2699_s24, 1024 }
 0x197   : > { %p1683_p11 = scmp.ne.s32.totalorder %s2699_s24, %s1682_s14 }
 0x198   : > { %740 = vrot.lane.b32.xlu1 %v2067_v39, %s1768_s17  ;;  %558 = vrot.lane.b32.xlu0 %v2109_v47, %s1764_s25 }
 0x199   : > { %p1684_p1 = pnand %p1683_p11, %p2786_p0 }
 0x19b   : > { %p1685_p3 = pneg %p1684_p1 }
 0x19c   : > { %560 = vrot.lane.b32.xlu1 %v2115_v49, %s1764_s25  ;;  %604 = vrot.lane.b32.xlu0 %v2109_v47, %s1765_s11 }
 0x1a0   : > { %736 = vrot.lane.b32.xlu1 %v2091_v45, %s1768_s17  ;;  %650 = vrot.lane.b32.xlu0 %v2109_v47, %s1766_s13 }
 0x1a4   : > { %606 = vrot.lane.b32.xlu1 %v2115_v49, %s1765_s11  ;;  %696 = vrot.lane.b32.xlu0 %v2109_v47, %s1767_s26  ;;  %s1399_s11 = sshll.u32 %s1839_s9, 10  ;;  %s1771_s9 = smov [#allocation8]  }
 0x1a8   : > { %778 = vrot.lane.b32.xlu1 %v2039_v31, %s1769_s19  ;;  %734 = vrot.lane.b32.xlu0 %v2081_v43, %s1768_s17 }
 0x1ac   : > { %652 = vrot.lane.b32.xlu1 %v2115_v49, %s1766_s13  ;;  %742 = vrot.lane.b32.xlu0 %v2109_v47, %s1768_s17 }
 0x1b0   : > { %786 = vrot.lane.b32.xlu1 %v2067_v39, %s1769_s19  ;;  %776 = vrot.lane.b32.xlu0 %v2035_v26, %s1769_s19 }
 0x1b4   : > { %824 = vrot.lane.b32.xlu1 %v2039_v31, %s1770_s16  ;;  %784 = vrot.lane.b32.xlu0 %v2061_v37, %s1769_s19 }
 0x1b8   : > { %832 = vrot.lane.b32.xlu1 %v2067_v39, %s1770_s16  ;;  %822 = vrot.lane.b32.xlu0 %v2035_v26, %s1770_s16 }
 0x1bc   : > { %698 = vrot.lane.b32.xlu1 %v2115_v49, %s1767_s26  ;;  %830 = vrot.lane.b32.xlu0 %v2061_v37, %s1770_s16 }
 0x1c0   : > { %782 = vrot.lane.b32.xlu1 %v2091_v45, %s1769_s19  ;;  %780 = vrot.lane.b32.xlu0 %v2081_v43, %s1769_s19 }
 0x1c2   : > { %v500_v50 = vpop.permute.xlu0 %499 }
 0x1c4   : > { %744 = vrot.lane.b32.xlu1 %v2115_v49, %s1768_s17  ;;  %788 = vrot.lane.b32.xlu0 %v2109_v47, %s1769_s19  ;;  %s2704_s17 = scalar_lea.hbm %s2759_s8, %s1399_s11 }
 0x1c6   : > { %v502_v51 = vpop.permute.xlu1 %501  ;;  %v2158_v52 = vpop.permute.xlu0 %546 }
 0x1c8   : > { %828 = vrot.lane.b32.xlu1 %v2091_v45, %s1770_s16  ;;  %826 = vrot.lane.b32.xlu0 %v2081_v43, %s1770_s16 }
 0x1ca   : > { %v2165_v54 = vpop.permute.xlu1 %548  ;;  %v2167_v55 = vpop.permute.xlu0 %592 }
 0x1cc   : > { %790 = vrot.lane.b32.xlu1 %v2115_v49, %s1769_s19  ;;  %834 = vrot.lane.b32.xlu0 %v2109_v47, %s1770_s16  ;;  %s1256_s19 = scalar_lea.sflag [#allocation4], %s1990_s15 }
 0x1ce   : > { %v2174_v57 = vpop.permute.xlu1 %594  ;;  %v2176_v58 = vpop.permute.xlu0 %638 }
 0x1d0   : > { %836 = vrot.lane.b32.xlu1 %v2115_v49, %s1770_s16  ;;  %886 = vperm.xlu0 %1586, %v880_v56  }
 0x1d2   : > { %v2185_v62 = vpop.permute.xlu1 %640  ;;  %v2187_v63 = vpop.permute.xlu0 %684 }
 0x1d4   : > { %891 = vperm.xlu1 %1587, %v881_v60   ;;  %896 = vperm.xlu0 %1586, %v882_v61  }
 0x1d6   : > { %v2195_v4 = vpop.permute.xlu1 %686  ;;  %v2197_v5 = vpop.permute.xlu0 %730 }
 0x1d8   : > { %901 = vperm.xlu1 %1587, %v883_v2   ;;  %1112 = vperm.xlu0 %1586, %v1106_v3  }
 0x1da   : > { %v2214_v12 = vpop.permute.xlu1 %732  ;;  %v508_v13 = vpop.permute.xlu0 %507 }
 0x1db   : > { %v518_v17 = vsel %vm517_vm1, %v500_v50, %v508_v13  ;;  %v522_v18 = vsel %vm517_vm1, %v508_v13, %v500_v50 }
 0x1dc   : > { %1117 = vperm.xlu1 %1587, %v1107_v10   ;;  %1122 = vperm.xlu0 %1586, %v1108_v11   ;;  %v538_v25 = vmul.f32 %v2218_v14, %v522_v18  ;;  %v539_v28 = vmul.f32 %v2226_v16, %v518_v17  ;;  %v2323_v17 = vrot.slane %v1381_v1, %v2201_v7 }
 0x1de   : > { %v510_v20 = vpop.permute.xlu1 %509  ;;  %v2236_v21 = vpop.permute.xlu0 %554 }
 0x1df   : > { %v519_v22 = vsel %vm517_vm1, %v502_v51, %v510_v20  ;;  %v523_v23 = vsel %vm517_vm1, %v510_v20, %v502_v51  ;;  %v567_v30 = vsel %vm562_vm2, %v2236_v21, %v2158_v52 }
 0x1e0   : > { %v540_v27 = vmul.f32 %v2218_v14, %v523_v23  ;;  %1127 = vperm.xlu1 %1587, %v1109_v19   ;;  %v541_v29 = vmul.f32 %v2226_v16, %v519_v22  ;;  %v2268_v41 = vmul.f32 %v2244_v24, %v567_v30 }
 0x1e2   : > { %v2257_v33 = vpop.permute.xlu1 %556  ;;  %v601_v34 = vpop.permute.xlu0 %600  ;;  %v1408_v35 = vpack.c.bf16 %v541_v29, %v539_v28  ;;  %v1410_v36 = vpack.c.bf16 %v540_v27, %v538_v25 }
 0x1e3   : > { %v568_v38 = vsel %vm562_vm2, %v2257_v33, %v2165_v54  ;;  %v609_v48 = vsel %vm608_vm3, %v2167_v55, %v601_v34  ;;  %v613_v50 = vsel %vm608_vm3, %v601_v34, %v2167_v55  ;;  %v2298_v55 = vrot.slane %v1380_v40, %v2203_v8 }
 0x1e4   : > { %v2271_v42 = vmul.f32 %v2244_v24, %v568_v38  ;;  %1409 = vmatprep.subr.bf16.mxu1 %v1408_v35  ;;  %v2305_v2 = vmul.f32 %v2274_v44, %v613_v50  ;;  %v2308_v3 = vmul.f32 %v2277_v46, %v609_v48 }
 0x1e5   : > { %1411 = vmatpush1.bf16.msra.mxu1 %v1410_v36 }
 0x1e6   : > { %v603_v51 = vpop.permute.xlu1 %602  ;;  %v647_v56 = vpop.permute.xlu0 %646 }
 0x1e7   : > { %v610_v60 = vsel %vm608_vm3, %v2174_v57, %v603_v51  ;;  %v614_v61 = vsel %vm608_vm3, %v603_v51, %v2174_v57  ;;  %v655_v10 = vsel %vm654_vm4, %v2176_v58, %v647_v56  ;;  %v659_v11 = vsel %vm654_vm4, %v647_v56, %v2176_v58 }
 0x1e8   : > { %v2311_v9 = vmul.f32 %v2274_v44, %v614_v61  ;;  %v2314_v57 = vmul.f32 %v2277_v46, %v610_v60  ;;  %v2336_v58 = vrot.slane %v1381_v1, %v2203_v8  ;;  %v2342_v27 = vmul.f32 %v2287_v53, %v659_v11 }
 0x1e9   : > { %v2345_v28 = vmul.f32 %v2298_v55, %v655_v10 }
 0x1ea   : > { %v649_v13 = vpop.permute.xlu1 %648  ;;  %v693_v18 = vpop.permute.xlu0 %692 }
 0x1eb   : > { %v656_v22 = vsel %vm654_vm4, %v2185_v62, %v649_v13  ;;  %v660_v23 = vsel %vm654_vm4, %v649_v13, %v2185_v62  ;;  %v701_v25 = vsel %vm700_vm5, %v2187_v63, %v693_v18  ;;  %v705_v62 = vsel %vm700_vm5, %v693_v18, %v2187_v63 }
 0x1ec   : > { %v2348_v29 = vmul.f32 %v2287_v53, %v660_v23  ;;  %v2351_v30 = vmul.f32 %v2298_v55, %v656_v22  ;;  %v2367_v48 = vmul.f32 %v2323_v17, %v701_v25  ;;  %v2370_v63 = vmul.f32 %v2336_v58, %v705_v62  ;;  %v1382_v62 = vld [vmem:[%s2755_s4 + $0xc] sm:$0x3] }
 0x1ed   : > { %v2411_v36 = vrot.slane %v1382_v62, %v2201_v7 }
 0x1ee   : > { %v695_v32 = vpop.permute.xlu1 %694  ;;  %v504_v34 = vpop.permute.xlu0 %503  ;;  %2776 = vst [vmem:[#allocation12_spill] sm:$0xff] %v2367_v48 }
 0x1ef   : > { %v702_v38 = vsel %vm700_vm5, %v2195_v4, %v695_v32  ;;  %v706_v40 = vsel %vm700_vm5, %v695_v32, %v2195_v4  ;;  %v564_v32 = vsel %vm562_vm2, %v2165_v54, %v2257_v33  ;;  %v563_v4 = vsel %vm562_vm2, %v2158_v52, %v2236_v21 }
 0x1f0   : > { %v2373_v50 = vmul.f32 %v2323_v17, %v702_v38  ;;  %v2376_v51 = vmul.f32 %v2336_v58, %v706_v40  ;;  %v581_v38 = vrot.slane %v2223_v15, %v2203_v8 }
 0x1f2   : > { %v506_v56 = vpop.permute.xlu1 %505  ;;  %v551_v60 = vpop.permute.xlu0 %550  ;;  %v587_v33 = vmul.f32 %v581_v38, %v564_v32  ;;  %v585_v19 = vmul.f32 %v581_v38, %v563_v4 }
 0x1f6   : > { %v553_v1 = vpop.permute.xlu1 %552  ;;  %v597_v10 = vpop.permute.xlu0 %596 }
 0x1fa   : > { %v2382_v11 = vpop.permute.xlu1 %598  ;;  %v2384_v13 = vpop.permute.xlu0 %642 }
 0x1fe   : > { %v2386_v18 = vpop.permute.xlu1 %644  ;;  %v2388_v22 = vpop.permute.xlu0 %688 }
 0x202   : > { %v2390_v23 = vpop.permute.xlu1 %690  ;;  %v512_v25 = vpop.permute.xlu0 %511 }
 0x203   : > { %v520_v40 = vsel %vm517_vm1, %v504_v34, %v512_v25  ;;  %v524_v0 = vsel %vm517_vm1, %v512_v25, %v504_v34  ;;  %v2418_v34 = vrot.slane %v1382_v62, %v2203_v8 }
 0x204   : > { %v542_v25 = vmul.f32 %v2218_v14, %v524_v0  ;;  %v543_v52 = vmul.f32 %v2226_v16, %v520_v40 }
 0x206   : > { %v514_v61 = vpop.permute.xlu1 %513  ;;  %v739_v54 = vpop.permute.xlu0 %738 }
 0x207   : > { %v521_v15 = vsel %vm517_vm1, %v506_v56, %v514_v61  ;;  %v525_v35 = vsel %vm517_vm1, %v514_v61, %v506_v56  ;;  %v747_v32 = vsel %vm746_vm6, %v2197_v5, %v739_v54  ;;  %v751_v56 = vsel %vm746_vm6, %v739_v54, %v2197_v5 }
 0x208   : > { %v544_v21 = vmul.f32 %v2218_v14, %v525_v35  ;;  %v545_v20 = vmul.f32 %v2226_v16, %v521_v15  ;;  %v1416_v16 = vpack.c.bf16 %v587_v33, %v585_v19  ;;  %v2437_v35 = vmul.f32 %v2411_v36, %v747_v32 }
 0x209   : > { %v2440_v4 = vmul.f32 %v2418_v34, %v751_v56  ;;  %v2777_v32 = vpack.c.bf16 %v2271_v42, %v2268_v41 }
 0x20a   : > { %v741_v61 = vpop.permute.xlu1 %740  ;;  %v559_v62 = vpop.permute.xlu0 %558  ;;  %v1412_v59 = vpack.c.bf16 %v545_v20, %v543_v52  ;;  %v1414_v48 = vpack.c.bf16 %v544_v21, %v542_v25 }
 0x20b   : > { %v748_v0 = vsel %vm746_vm6, %v2214_v12, %v741_v61  ;;  %v752_v14 = vsel %vm746_vm6, %v741_v61, %v2214_v12  ;;  %v565_v40 = vsel %vm562_vm2, %v551_v60, %v559_v62  ;;  %v569_v12 = vsel %vm562_vm2, %v559_v62, %v551_v60 }
 0x20c   : > { %v2443_v5 = vmul.f32 %v2411_v36, %v748_v0  ;;  %v2446_v20 = vmul.f32 %v2418_v34, %v752_v14  ;;  %1413 = vmatprep.subr.bf16.mxu1 %v1412_v59  ;;  %v588_v52 = vmul.f32 %v2244_v24, %v569_v12  ;;  %v589_v21 = vmul.f32 %v581_v38, %v565_v40 }
 0x20d   : > { %1415 = vmatpush1.bf16.msra.mxu1 %v1414_v48 }
 0x20e   : > { %v561_v19 = vpop.permute.xlu1 %560  ;;  %1417 = vmatprep.subr.bf16.mxu1 %v1416_v16  ;;  %v605_v54 = vpop.permute.xlu0 %604  ;;  %v1456_v33 = vpack.c.bf16 %v2446_v20, %v2440_v4  ;;  %v1458_v15 = vpack.c.bf16 %v2443_v5, %v2437_v35 }
 0x20f   : > { %v566_v25 = vsel %vm562_vm2, %v553_v1, %v561_v19  ;;  %v570_v59 = vsel %vm562_vm2, %v561_v19, %v553_v1  ;;  %v611_v14 = vsel %vm608_vm3, %v597_v10, %v605_v54  ;;  %v615_v1 = vsel %vm608_vm3, %v605_v54, %v597_v10 }
 0x210   : > { %v590_v48 = vmul.f32 %v2244_v24, %v570_v59  ;;  %v591_v60 = vmul.f32 %v581_v38, %v566_v25  ;;  %v2778_v24 = vpack.c.bf16 %v2314_v57, %v2308_v3  ;;  %v634_v40 = vmul.f32 %v2274_v44, %v615_v1 }
 0x211   : > { %1419 = vmatpush1.bf16.msra.mxu1 %v2777_v32  ;;  %v635_v12 = vmul.f32 %v2277_v46, %v611_v14  ;;  %v2779_v3 = vpack.c.bf16 %v2311_v9, %v2305_v2  ;;  %v2780_v2 = vpack.c.bf16 %v2351_v30, %v2345_v28  ;;  %v2781_v28 = vpack.c.bf16 %v2348_v29, %v2342_v27  ;;  %v1384_v27 = vld [vmem:[%s2755_s4 + $0x10] sm:$0x3] }
 0x212   : > { %v2465_v56 = vpop.permute.xlu1 %736  ;;  %v651_v61 = vpop.permute.xlu0 %650  ;;  %v1420_v62 = vpack.c.bf16 %v591_v60, %v589_v21  ;;  %v1422_v0 = vpack.c.bf16 %v590_v48, %v588_v52  ;;  %v1444_v29 = vpack.c.bf16 %v2115_v49, %v2109_v47  ;;  %v2528_v1 = vrot.slane %v1384_v27, %v2201_v7 }
 0x214   : > { %1421 = vmatprep.subr.bf16.mxu1 %v1420_v62 }
 0x215   : > { %1423 = vmatpush1.bf16.msra.mxu1 %v1422_v0 }
 0x216   : > { %v607_v16 = vpop.permute.xlu1 %606  ;;  %1425 = vmatprep.subr.bf16.mxu1 %v2778_v24  ;;  %v697_v41 = vpop.permute.xlu0 %696 }
 0x217   : > { %v612_v42 = vsel %vm608_vm3, %v2382_v11, %v607_v16  ;;  %v616_v38 = vsel %vm608_vm3, %v607_v16, %v2382_v11  ;;  %v657_v11 = vsel %vm654_vm4, %v2384_v13, %v651_v61  ;;  %v707_v47 = vsel %vm700_vm5, %v697_v41, %v2388_v22 }
 0x218   : > { %v636_v10 = vmul.f32 %v2274_v44, %v616_v38  ;;  %v637_v19 = vmul.f32 %v2277_v46, %v612_v42  ;;  %v661_v44 = vsel %vm654_vm4, %v651_v61, %v2384_v13  ;;  %v681_v60 = vmul.f32 %v2298_v55, %v657_v11  ;;  %v2783_v11 = vld [vmem:[#allocation12_spill] sm:$0xff] }
 0x219   : > { %1427 = vmatpush1.bf16.msra.mxu1 %v2779_v3  ;;  %v680_v48 = vmul.f32 %v2287_v53, %v661_v44  ;;  %v727_v38 = vmul.f32 %v2336_v58, %v707_v47  ;;  %v2784_v44 = vpack.c.bf16 %v2373_v50, %v2783_v11  ;;  %v874_v11 = vld [vmem:[%s2754_s3 + $0x30] sm:$0xff] }
 0x21a   : > { %v2487_v57 = vpop.permute.xlu1 %778  ;;  %v2489_v54 = vpop.permute.xlu0 %734  ;;  %v1428_v25 = vpack.c.bf16 %v637_v19, %v635_v12  ;;  %v1430_v59 = vpack.c.bf16 %v636_v10, %v634_v40 }
 0x21c   : > { %1429 = vmatprep.subr.bf16.mxu1 %v1428_v25 }
 0x21d   : > { %1431 = vmatpush1.bf16.msra.mxu1 %v1430_v59 }
 0x21e   : > { %v653_v46 = vpop.permute.xlu1 %652  ;;  %1433 = vmatprep.subr.bf16.mxu1 %v2780_v2  ;;  %v743_v9 = vpop.permute.xlu0 %742 }
 0x21f   : > { %v658_v52 = vsel %vm654_vm4, %v2386_v18, %v653_v46  ;;  %v662_v21 = vsel %vm654_vm4, %v653_v46, %v2386_v18  ;;  %v1440_v18 = vpack.c.bf16 %v2067_v39, %v2061_v37  ;;  %v2531_v37 = vrot.slane %v1384_v27, %v2203_v8 }
 0x220   : > { %v682_v13 = vmul.f32 %v2287_v53, %v662_v21  ;;  %v683_v32 = vmul.f32 %v2298_v55, %v658_v52  ;;  %v1442_v55 = vpack.c.bf16 %v2039_v31, %v2035_v26  ;;  %v1446_v26 = vpack.c.bf16 %v2091_v45, %v2081_v43 }
 0x221   : > { %1435 = vmatpush1.bf16.msra.mxu1 %v2781_v28  ;;  %v703_v31 = vsel %vm700_vm5, %v2388_v22, %v697_v41  ;;  %v2782_v22 = vpack.c.bf16 %v2376_v51, %v2370_v63 }
 0x222   : > { %v2513_v30 = vpop.permute.xlu1 %786  ;;  %v2515_v61 = vpop.permute.xlu0 %776  ;;  %v1436_v62 = vpack.c.bf16 %v683_v32, %v681_v60  ;;  %v1438_v0 = vpack.c.bf16 %v682_v13, %v680_v48  ;;  %v726_v42 = vmul.f32 %v2323_v17, %v703_v31  ;;  %v753_v60 = vsel %vm746_vm6, %v743_v9, %v2489_v54 }
 0x224   : > { %1437 = vmatprep.subr.bf16.mxu1 %v1436_v62 }
 0x225   : > { %1439 = vmatpush1.bf16.msra.mxu1 %v1438_v0 }
 0x226   : > { %v825_v14 = vpop.permute.xlu1 %824  ;;  %1441 = vmatprep.subr.bf16.mxu1 %v1440_v18  ;;  %v785_v53 = vpop.permute.xlu0 %784 }
 0x227   : > { %v797_v50 = vsel %vm792_vm8, %v785_v53, %v2515_v61  ;;  %v793_v4 = vsel %vm792_vm8, %v2515_v61, %v785_v53 }
 0x229   : > { %1443 = vmatpush1.bf16.msra.mxu1 %v1442_v55 }
 0x22a   : > { %v833_v39 = vpop.permute.xlu1 %832  ;;  %v823_v16 = vpop.permute.xlu0 %822  ;;  %1445 = vmatprep.subr.bf16.mxu1 %v1444_v29 }
 0x22b   : > { %v840_v49 = vsel %vm838_vm7, %v825_v14, %v833_v39  ;;  %v844_v24 = vsel %vm838_vm7, %v833_v39, %v825_v14 }
 0x22c   : > { %v862_v43 = vmul.f32 %v2528_v1, %v840_v49  ;;  %v863_v45 = vmul.f32 %v2531_v37, %v844_v24 }
 0x22d   : > { %1447 = vmatpush1.bf16.msra.mxu1 %v1446_v26 }
 0x22e   : > { %v699_v40 = vpop.permute.xlu1 %698  ;;  %v831_v12 = vpop.permute.xlu0 %830  ;;  %1449 = vmatprep.subr.bf16.mxu1 %v2782_v22 }
 0x22f   : > { %v704_v41 = vsel %vm700_vm5, %v2390_v23, %v699_v40  ;;  %v708_v10 = vsel %vm700_vm5, %v699_v40, %v2390_v23  ;;  %v839_v19 = vsel %vm838_vm7, %v823_v16, %v831_v12  ;;  %v843_v3 = vsel %vm838_vm7, %v831_v12, %v823_v16 }
 0x230   : > { %v728_v25 = vmul.f32 %v2323_v17, %v704_v41  ;;  %v729_v59 = vmul.f32 %v2336_v58, %v708_v10  ;;  %v860_v63 = vmul.f32 %v2528_v1, %v839_v19  ;;  %v861_v51 = vmul.f32 %v2531_v37, %v843_v3  ;;  %v1383_v58 = vld [vmem:[%s2755_s4 + $0xe] sm:$0x3]  ;;  %v868_v3 = vld [vmem:[%s2754_s3] sm:$0xff] }
 0x231   : > { %1451 = vmatpush1.bf16.msra.mxu1 %v2784_v44  ;;  %v749_v17 = vsel %vm746_vm6, %v2489_v54, %v743_v9  ;;  %v811_v32 = vrot.slane %v1383_v58, %v2203_v8  ;;  %v773_v54 = vmul.f32 %v2418_v34, %v753_v60  ;;  %v798_v9 = vsel %vm792_vm8, %v2513_v30, %v2487_v57  ;;  %v873_v44 = vld [vmem:[%s2754_s3 + $0x28] sm:$0xff] }
 0x232   : > { %v1474_v46 = vpack.c.bf16 %v862_v43, %v860_v63  ;;  %v783_v23 = vpop.permute.xlu1 %782  ;;  %v781_v2 = vpop.permute.xlu0 %780  ;;  %v1452_v52 = vpack.c.bf16 %v729_v59, %v727_v38  ;;  %v1472_v21 = vpack.c.bf16 %v863_v45, %v861_v51  ;;  %v1454_v48 = vpack.c.bf16 %v728_v25, %v726_v42  ;;  %v875_v63 = vld [vmem:[%s2754_s3 + $0x38] sm:$0xff] }
 0x233   : > { %v772_v13 = vmul.f32 %v2411_v36, %v749_v17  ;;  %v815_v20 = vmul.f32 %v811_v32, %v797_v50  ;;  %v807_v14 = vrot.slane %v1383_v58, %v2201_v7  ;;  %v817_v55 = vmul.f32 %v811_v32, %v798_v9 }
 0x234   : > { %1453 = vmatprep.subr.bf16.mxu1 %v1452_v52  ;;  %1473 = vmatprep.subr.bf16.mxu0 %v1472_v21  ;;  %v2785_v51 = vmov 0.0   ;;  %v879_v52 = vld [vmem:[%s2754_s3 + $0x58] sm:$0xff] }
 0x235   : > { %1455 = vmatpush1.bf16.msra.mxu1 %v1454_v48  ;;  %1475 = vmatpush1.bf16.msra.mxu0 %v1474_v46  ;;  %v814_v39 = vmul.f32 %v807_v14, %v793_v4  ;;  %v878_v46 = vld [vmem:[%s2754_s3 + $0x50] sm:$0xff] }
 0x236   : > { %v745_v28 = vpop.permute.xlu1 %744  ;;  %v789_v62 = vpop.permute.xlu0 %788  ;;  %1457 = vmatprep.subr.bf16.mxu1 %v1456_v33 }
 0x237   : > { %v750_v0 = vsel %vm746_vm6, %v2465_v56, %v745_v28  ;;  %v754_v8 = vsel %vm746_vm6, %v745_v28, %v2465_v56  ;;  %v794_v56 = vsel %vm792_vm8, %v2487_v57, %v2513_v30  ;;  %v795_v7 = vsel %vm792_vm8, %v781_v2, %v789_v62 }
 0x238   : > { %v774_v33 = vmul.f32 %v2411_v36, %v750_v0  ;;  %v775_v18 = vmul.f32 %v2418_v34, %v754_v8  ;;  %v1464_v36 = vpack.c.bf16 %v817_v55, %v815_v20  ;;  %v816_v34 = vmul.f32 %v807_v14, %v794_v56 }
 0x239   : > { %1459 = vmatpush1.bf16.msra.mxu1 %v1458_v15  ;;  %v799_v35 = vsel %vm792_vm8, %v789_v62, %v781_v2  ;;  %v818_v26 = vmul.f32 %v807_v14, %v795_v7  ;;  %v876_v2 = vld [vmem:[%s2754_s3 + $0x40] sm:$0xff] }
 0x23a   : > { %v829_v27 = vpop.permute.xlu1 %828  ;;  %v827_v29 = vpop.permute.xlu0 %826  ;;  %v1460_v61 = vpack.c.bf16 %v775_v18, %v773_v54  ;;  %v1462_v53 = vpack.c.bf16 %v774_v33, %v772_v13  ;;  %v1466_v16 = vpack.c.bf16 %v816_v34, %v814_v39  ;;  %v819_v31 = vmul.f32 %v811_v32, %v799_v35 }
 0x23c   : > { %1461 = vmatprep.subr.bf16.mxu1 %v1460_v61 }
 0x23d   : > { %1463 = vmatpush1.bf16.msra.mxu1 %v1462_v53 }
 0x23e   : > { %v791_v5 = vpop.permute.xlu1 %790  ;;  %v835_v15 = vpop.permute.xlu0 %834  ;;  %1465 = vmatprep.subr.bf16.mxu1 %v1464_v36 }
 0x23f   : > { %v796_v57 = vsel %vm792_vm8, %v783_v23, %v791_v5  ;;  %v800_v30 = vsel %vm792_vm8, %v791_v5, %v783_v23  ;;  %v841_v24 = vsel %vm838_vm7, %v827_v29, %v835_v15  ;;  %v845_v42 = vsel %vm838_vm7, %v835_v15, %v827_v29  ;;  %v877_v23 = vld [vmem:[%s2754_s3 + $0x48] sm:$0xff] }
 0x240   : > { %v820_v47 = vmul.f32 %v807_v14, %v796_v57  ;;  %v821_v49 = vmul.f32 %v811_v32, %v800_v30  ;;  %v864_v22 = vmul.f32 %v2528_v1, %v841_v24  ;;  %v865_v41 = vmul.f32 %v2531_v37, %v845_v42 }
 0x241   : > { %1467 = vmatpush1.bf16.msra.mxu1 %v1466_v16 }
 0x242   : > { %v837_v38 = vpop.permute.xlu1 %836  ;;  %v1468_v43 = vpack.c.bf16 %v821_v49, %v819_v31  ;;  %v1470_v45 = vpack.c.bf16 %v820_v47, %v818_v26 }
 0x243   : > { %v842_v40 = vsel %vm838_vm7, %v829_v27, %v837_v38  ;;  %v846_v12 = vsel %vm838_vm7, %v837_v38, %v829_v27 }
 0x244   : > { %v866_v10 = vmul.f32 %v2528_v1, %v842_v40  ;;  %v867_v19 = vmul.f32 %v2531_v37, %v846_v12  ;;  %1469 = vmatprep.subr.bf16.mxu1 %v1468_v43  ;;  %v871_v1 = vld [vmem:[%s2754_s3 + $0x18] sm:$0xff]  ;;  %v870_v37 = vld [vmem:[%s2754_s3 + $0x10] sm:$0xff] }
 0x245   : > { %1471 = vmatpush1.bf16.msra.mxu1 %v1470_v45 }
 0x246   : > { %v1478_v25 = vpack.c.bf16 %v866_v10, %v864_v22  ;;  %v1476_v59 = vpack.c.bf16 %v867_v19, %v865_v41  ;;  %v1102_v10 = vld [vmem:[#allocation7] sm:$0xff]  ;;  %v1103_v19 = vld [vmem:[#allocation7 + $0x8] sm:$0xff] }
 0x248   : > { %981 = vmatmul.mubr.f32.vlgmr.msra.gmra.mrb[0].mxu1 %v868_v3  ;;  %1477 = vmatprep.subr.bf16.mxu0 %v1476_v59  ;;  %v1104_v3 = vld [vmem:[#allocation7 + $0x10] sm:$0xff] }
 0x249   : > { %1479 = vmatpush1.bf16.msra.mxu0 %v1478_v25  ;;  %986 = vmatprep.mubr.f32.mxu1 %v872_v6  ;;  %v1105_v25 = vld [vmem:[#allocation7 + $0x18] sm:$0xff] }
 0x24c   : > { %987 = vmatmul.mubr.f32.gmra.mrb[2].mxu1 %v871_v1  ;;  %1385 = vmatmul.mubr.msk.f32.vlgmr.msra.gmra.mrb[8].mxu0 %vm389_vm0, %v870_v37 }
 0x24d   : > { %1075 = vmatprep.mubr.f32.mxu0 %v2785_v51  ;;  %992 = vmatprep.mubr.f32.mxu1 %v875_v63 }
 0x24f   : > { %v887_v17 = vpop.permute.xlu0 %886 }
 0x250   : > { %993 = vmatmul.mubr.f32.gmra.mrb[4].mxu1 %v874_v11  ;;  %1386 = vmatmul.mubr.msk.f32.gmra.mrb[10].mxu0 %vm389_vm0, %v873_v44  ;;  %v1588_v11 = vld [vmem:[%s1996_s18] sm:$0xff] }
 0x251   : > { %1081 = vmatprep.mubr.f32.mxu0 %v2785_v51  ;;  %998 = vmatprep.mubr.f32.mxu1 %v878_v46 }
 0x253   : > { %v892_v54 = vpop.permute.xlu1 %891  ;;  %v897_v56 = vpop.permute.xlu0 %896 }
 0x254   : > { %999 = vmatmul.mubr.f32.gmra.mrb[6].mxu1 %v877_v23  ;;  %1387 = vmatmul.mubr.msk.f32.gmra.mrb[12].mxu0 %vm389_vm0, %v876_v2  ;;  %v1589_v23 = vld [vmem:[%s1996_s18 + $0x8] sm:$0xff] }
 0x255   : > { %1087 = vmatprep.mubr.f32.mxu0 %v2785_v51 }
 0x257   : > { %v902_v30 = vpop.permute.xlu1 %901  ;;  %v1113_v59 = vpop.permute.xlu0 %1112 }
 0x258   : > { %1388 = vmatmul.mubr.msk.f32.gmra.mrb[14].mxu0 %vm389_vm0, %v879_v52 }
 0x259   : > { %1206 = vmatprep.mubr.f32.mxu0 %v2785_v51 }
 0x25b   : > { %v1118_v46 = vpop.permute.xlu1 %1117 }
 0x31b   : > { %v982_v21 = vpop.f32.mrb[0].mxu1 }
 0x31c   : > { %v984_v48 = vpop.f32.mrb[1].mxu1  ;;  %v983_v58 = vadd.f32 %v982_v21, %v887_v17 }
 0x31d   : > { %v985_v60 = vadd.f32 %v984_v48, %v887_v17 }
 0x31f   : > { %v988_v50 = vpop.f32.mrb[2].mxu1  ;;  %v1071_v13 = vpop.f32.mrb[8].mxu0 }
 0x320   : > { %v1072_v32 = vadd.f32 %v1071_v13, %v983_v58  ;;  %v990_v28 = vpop.f32.mrb[3].mxu1  ;;  %v1073_v62 = vpop.f32.mrb[9].mxu0  ;;  %v989_v0 = vadd.f32 %v988_v50, %v892_v54 }
 0x321   : > { %v1074_v9 = vadd.f32 %v1073_v62, %v985_v60  ;;  %v991_v8 = vadd.f32 %v990_v28, %v892_v54  ;;  %v1590_v60 = vld [vmem:[%s1996_s18 + $0x10] sm:$0xff]  ;;  %v1123_v13 = vpop.permute.xlu0 %1122 }
 0x322   : > { %v1094_v27 = vmax.f32 %v1072_v32, 0.0  ;;  %v1591_v32 = vld [vmem:[%s1996_s18 + $0x18] sm:$0xff] }
 0x323   : > { %v994_v4 = vpop.f32.mrb[4].mxu1  ;;  %v1077_v20 = vpop.f32.mrb[10].mxu0  ;;  %v1095_v53 = vmax.f32 %v1074_v9, 0.0 }
 0x324   : > { %v1078_v33 = vadd.f32 %v1077_v20, %v989_v0  ;;  %v996_v18 = vpop.f32.mrb[5].mxu1  ;;  %v1079_v14 = vpop.f32.mrb[11].mxu0  ;;  %v995_v29 = vadd.f32 %v994_v4, %v897_v56  ;;  %v1592_v20 = vld [vmem:[%s1996_s18 + $0x20] sm:$0xff] }
 0x325   : > { %v1080_v55 = vadd.f32 %v1079_v14, %v991_v8  ;;  %v997_v39 = vadd.f32 %v996_v18, %v897_v56  ;;  %v1128_v18 = vpop.permute.xlu1 %1127  ;;  %v1593_v14 = vld [vmem:[%s1996_s18 + $0x28] sm:$0xff] }
 0x326   : > { %v1096_v61 = vmax.f32 %v1078_v33, 0.0 }
 0x327   : > { %v1097_v36 = vmax.f32 %v1080_v55, 0.0  ;;  %v1000_v34 = vpop.f32.mrb[6].mxu1  ;;  %v1083_v7 = vpop.f32.mrb[12].mxu0 }
 0x328   : > { %v1482_v35 = vpack.c.bf16 %v1096_v61, %v1094_v27  ;;  %v1084_v5 = vadd.f32 %v1083_v7, %v995_v29  ;;  %v1002_v15 = vpop.f32.mrb[7].mxu1  ;;  %v1085_v57 = vpop.f32.mrb[13].mxu0  ;;  %v1001_v31 = vadd.f32 %v1000_v34, %v902_v30  ;;  %v1595_v7 = vld [vmem:[%s1996_s18 + $0x38] sm:$0xff] }
 0x329   : > { %v1480_v16 = vpack.c.bf16 %v1097_v36, %v1095_v53  ;;  %v1086_v26 = vadd.f32 %v1085_v57, %v997_v39  ;;  %v1003_v47 = vadd.f32 %v1002_v15, %v902_v30  ;;  %v1594_v36 = vld [vmem:[%s1996_s18 + $0x30] sm:$0xff]  ;;  %s1686_s18 = sshll.u32 %s1771_s9, 4  ;;  %s1687_s18 = int_to_ptr.vmem [resolvable:$false] %s1686_s18 }
 0x32a   : > { %v1098_v43 = vmax.f32 %v1084_v5, 0.0  ;;  %s1688_s21 = scalar_lea.vmem %s1687_s18, 2048  ;;  %p1689_p7 = scmp.lt.s32.totalorder %s2699_s24, %s1687_s18 }
 0x32b   : > { %v1089_v49 = vpop.f32.mrb[14].mxu0  ;;  %1481 = vmatprep.subr.bf16.mxu0 %v1480_v16  ;;  %v1099_v40 = vmax.f32 %v1086_v26, 0.0  ;;  %p1690_p9 = scmp.lt.s32.totalorder %s1688_s21, %s1682_s14 }
 0x32c   : > { %v1090_v24 = vadd.f32 %v1089_v49, %v1001_v31  ;;  %v1091_v42 = vpop.f32.mrb[15].mxu0  ;;  %1483 = vmatpush1.bf16.msra.mxu0 %v1482_v35 }
 0x32d   : > { %v1092_v38 = vadd.f32 %v1091_v42, %v1003_v47  ;;  %p1691_p12 = por %p1690_p9, %p1689_p7 }
 0x32e   : > { %v1100_v45 = vmax.f32 %v1090_v24, 0.0 }
 0x32f   : > { %v1101_v12 = vmax.f32 %v1092_v38, 0.0  ;;  %p1692_p2 = pnand %p1691_p12, %p1685_p3 }
 0x330   : > { %v1486_v22 = vpack.c.bf16 %v1100_v45, %v1098_v43 }
 0x331   : > { %v1484_v41 = vpack.c.bf16 %v1101_v12, %v1099_v40 }
 0x333   : > { %1485 = vmatprep.subr.bf16.mxu0 %v1484_v41 }
 0x334   : > { %1487 = vmatpush1.bf16.msra.mxu0 %v1486_v22 }
 0x337   : > { %1389 = vmatmul.mubr.msk.f32.vlgmr.msra.gmra.mrb[16].mxu0 %vm389_vm0, %v1102_v10 }
 0x338   : > { %1212 = vmatprep.mubr.f32.mxu0 %v2785_v51 }
 0x33b   : > { %1390 = vmatmul.mubr.msk.f32.gmra.mrb[18].mxu0 %vm389_vm0, %v1103_v19 }
 0x33c   : > { %1218 = vmatprep.mubr.f32.mxu0 %v2785_v51 }
 0x33f   : > { %1391 = vmatmul.mubr.msk.f32.gmra.mrb[20].mxu0 %vm389_vm0, %v1104_v3 }
 0x340   : > { %1224 = vmatprep.mubr.f32.mxu0 %v2785_v51 }
 0x343   : > { %1392 = vmatmul.mubr.msk.f32.gmra.mrb[22].mxu0 %vm389_vm0, %v1105_v25 }
 0x40a   : > { %v1208_v6 = vpop.f32.mrb[16].mxu0 }
 0x40b   : > { %v1209_v1 = vadd.f32 %v1208_v6, %v1113_v59  ;;  %v1210_v37 = vpop.f32.mrb[17].mxu0 }
 0x40c   : > { %v1211_v63 = vadd.f32 %v1210_v37, %v1113_v59 }
 0x40d   : > { %v1231_v44 = vadd.f32 %v1588_v11, %v1209_v1 }
 0x40e   : > { %v1232_v2 = vadd.f32 %v1589_v23, %v1211_v63  ;;  %v1214_v52 = vpop.f32.mrb[18].mxu0 }
 0x40f   : > { %v1239_v21 = vmax.f32 %v1231_v44, 0.0  ;;  %v1215_v48 = vadd.f32 %v1214_v52, %v1118_v46  ;;  %v1216_v51 = vpop.f32.mrb[19].mxu0 }
 0x410   : > { %v1240_v17 = vmax.f32 %v1232_v2, 0.0  ;;  %v1217_v58 = vadd.f32 %v1216_v51, %v1118_v46 }
 0x411   : > { %1247 = vst [vmem:[%s2683_s10] sm:$0xff] %v1239_v21  ;;  %v1233_v50 = vadd.f32 %v1590_v60, %v1215_v48 }
 0x412   : > { %1248 = vst [vmem:[%s2683_s10 + $0x8] sm:$0xff] %v1240_v17  ;;  %v1234_v28 = vadd.f32 %v1591_v32, %v1217_v58  ;;  %v1220_v62 = vpop.f32.mrb[20].mxu0 }
 0x413   : > { %v1241_v54 = vmax.f32 %v1233_v50, 0.0  ;;  %v1221_v9 = vadd.f32 %v1220_v62, %v1123_v13  ;;  %v1222_v0 = vpop.f32.mrb[21].mxu0 }
 0x414   : > { %v1242_v8 = vmax.f32 %v1234_v28, 0.0  ;;  %v1223_v4 = vadd.f32 %v1222_v0, %v1123_v13 }
 0x415   : > { %1249 = vst [vmem:[%s2683_s10 + $0x10] sm:$0xff] %v1241_v54  ;;  %v1235_v33 = vadd.f32 %v1592_v20, %v1221_v9 }
 0x416   : > { %1250 = vst [vmem:[%s2683_s10 + $0x18] sm:$0xff] %v1242_v8  ;;  %v1236_v56 = vadd.f32 %v1593_v14, %v1223_v4  ;;  %v1226_v55 = vpop.f32.mrb[22].mxu0 }
 0x417   : > { %v1243_v27 = vmax.f32 %v1235_v33, 0.0  ;;  %v1227_v29 = vadd.f32 %v1226_v55, %v1128_v18  ;;  %v1228_v61 = vpop.f32.mrb[23].mxu0 }
 0x418   : > { %v1244_v53 = vmax.f32 %v1236_v56, 0.0  ;;  %v1229_v39 = vadd.f32 %v1228_v61, %v1128_v18 }
 0x419   : > { %1251 = vst [vmem:[%s2683_s10 + $0x20] sm:$0xff] %v1243_v27  ;;  %v1237_v34 = vadd.f32 %v1594_v36, %v1227_v29 }
 0x41a   : > { %1252 = vst [vmem:[%s2683_s10 + $0x28] sm:$0xff] %v1244_v53  ;;  %v1238_v35 = vadd.f32 %v1595_v7, %v1229_v39 }
 0x41b   : > { %v1245_v5 = vmax.f32 %v1237_v34, 0.0 }
 0x41c   : > { %v1246_v15 = vmax.f32 %v1238_v35, 0.0 }
 0x41d   : > { %1253 = vst [vmem:[%s2683_s10 + $0x30] sm:$0xff] %v1245_v5 }
 0x41e   : > { %1254 = vst [vmem:[%s2683_s10 + $0x38] sm:$0xff] %v1246_v15 }
 0x41f   : > { %1695 = shalt.err (!%p1692_p2)
}
 0x420   : > { %s1696_s16 = scalar_lea.hbm %s2704_s17, 1024  ;;  %s1700_s13 = scalar_lea.hbm %s2759_s8, 2048 }
 0x421   : > { %p1697_p13 = scmp.ne.s32.totalorder %s2704_s17, %s1696_s16  ;;  %p1701_p4 = scmp.lt.u32.totalorder %s2704_s17, %s2759_s8 }
 0x422   : > { %p1702_p5 = scmp.lt.u32.totalorder %s1700_s13, %s1696_s16  ;;  %p1704_p11 = scmp.lt.u32.totalorder %s1696_s16, %s2704_s17 }
 0x423   : > { %p1698_p6 = pnand %p1697_p13, %p2786_p0 }
 0x424   : > { %p1703_p8 = por %p1702_p5, %p1701_p4 }
 0x425   : > { %p1699_p10 = pneg %p1698_p6 }
 0x426   : > { %p1705_p1 = por %p1704_p11, %p1703_p8 }
 0x428   : > { %p1706_p3 = pnand %p1705_p1, %p1699_p10 }
 0x42a   : > { %1709 = shalt.err (!%p1706_p3)
}
 0x42b   : > { %s1772_s14 = smov 256  }
 0x42c   : > { %1514 = dma.vmem_to_hbm [thread:$0]  (%p2786_p0), %s2699_s24, 1024, %s2704_s17, %s1256_s19, %s1772_s14, %s1772_s14, %s1764_s25  }
 0x42d PF: > { %s1284_s18 = sand.u32 1, %s1740_s27   ;;  %p2787_p7 = scmp.ne.s32.totalorder %s2767_s12, 0 }
 0x42e   : > { %p2788_p9 = scmp.ge.s32.totalorder %s1752_s30, 2  ;;  %s1285_s21 = scalar_lea.sflag [#allocation4], %s1284_s18 }
 0x430   : > { %p1528_p12 = pnand %p2788_p9, %p2787_p7 }
 0x432   : > { %1735 = dma.done.wait (!%p1528_p12), %s1285_s21, 1024  }
 0x433   : > { %1737 = vsyncadd (!%p1528_p12), %s1285_s21, 4294966272  ;;  %p22_p2 = scmp.ge.s32.totalorder %s1928_s20, 4   ;;  %s2789_s27 = smov %s1744_s28 }
 0x434   : > { %s2790_s28 = smov %s1748_s29  ;;  %s2791_s29 = smov %s1944_s23 }
 0x435   : > { %s2792_s30 = smov %s1928_s20  ;;  %24 = sbr.rel (!%p22_p2) target bundleno = 6 (0x6), region = 112 }
 0x43c   :  { %1290 = vsyncpa [#allocation3], 1 }
 0x43d   :  { %1292 = vsyncpa [#allocation3 + $0x1], 1 }
 0x43e   :  { %1293 = vsyncpa [#allocation6], 1 }
 0x43f   :  { %1294 = vsyncpa [#allocation4], 1 }
 0x440   :  { %1296 = vsyncpa [#allocation4 + $0x1], 1 }

</bundles_post_ra>
